<compile_context>
chip_gen: v7x
topology: tpu7x:2x2x1
jax: 0.10.0
libtpu: 0.0.40
codegen_flags: <defaults>
</compile_context>

<pallas_src>
import math
import functools

import jax
import jax.numpy as jnp
from jax import lax
from jax.experimental import pallas as pl
from jax.experimental.pallas import tpu as pltpu


def _round_up(a, m):
    return ((a + m - 1) // m) * m


def _largest_divisor_at_most(n, cap):
    cap = max(1, min(n, cap))
    for c in range(cap, 0, -1):
        if n % c == 0:
            return c
    return 1


def _layernorm(x, gamma, beta, eps=1e-5):
    mu = jnp.mean(x, axis=-1, keepdims=True)
    var = jnp.mean((x - mu) ** 2, axis=-1, keepdims=True)
    return (x - mu) * lax.rsqrt(var + eps) * gamma + beta


def _gelu_exact(x):
    # nn.GELU default (erf-based, not tanh approximation).
    # Kept in f32 on all generations (v5e has no bf16 VPU/EUP; erf lowering
    # only exercised in f32).  On v6e/v7x a bf16 EUP GELU would halve the
    # transcendental work.
    return 0.5 * x * (1.0 + lax.erf(x * (1.0 / math.sqrt(2.0))))


def block_kernel(
    # inputs
    x_ref,                       # (1, Np, C)  activations
    g1_ref, b1_ref,              # norm1 gamma/beta                  (1, C)
    wqkv_ref,                    # grouped qkv weights (gate+scale folded)
                                 #   (3*num_groups, C, GD)  bf16
    wproj_ref, bproj_ref,        # grouped proj weights (num_groups, GD, C) bf16, (1, C)
    g2_ref, b2_ref,              # norm2 gamma/beta                  (1, C)
    wfc1_ref, bfc1_ref,          # chunked fc1  (num_hchunks, C, hc) bf16, (num_hchunks, 1, hc)
    wfc2_ref, bfc2_ref,          # chunked fc2 (gate folded) (num_hchunks, hc, C) bf16, (1, C)
    # outputs
    out_ref,                     # (1, Np, C)
    # scratch
    xn_ref,                      # (Np, C)  compute-dtype staging (norm1 out, reused for norm2 out)
    acc_ref,                     # (Np, C)  f32 accumulator (attn-proj sum, reused for MLP sum)
    x2_ref,                      # (Np, C)  f32 residual after attention
    *, num_heads, head_dim, heads_per_group, n_valid,
):
    f32 = jnp.float32
    cdt = wqkv_ref.dtype                                  # MXU compute dtype (bf16)
    Np = x_ref.shape[1]
    D = head_dim
    num_groups = num_heads // heads_per_group
    num_hchunks = wfc1_ref.shape[0]

    # ---- norm1, staged for the attention loop -------------------------------
    x = x_ref[0].astype(f32)
    xn = _layernorm(x, g1_ref[...].astype(f32), b1_ref[...].astype(f32))
    xn_ref[...] = xn.astype(cdt)
    acc_ref[...] = jnp.zeros_like(acc_ref)

    need_mask = n_valid < Np                               # static python bool
    if need_mask:
        col_ids = lax.broadcasted_iota(jnp.int32, (Np, Np), 1)
        key_mask = col_ids < n_valid                       # mask padded key columns

    # ---- attention: fori_loop over head groups (proj fused in) --------------
    def head_group_body(g, carry):
        xn_c = xn_ref[...]                                 # per-iter load (bounded live range)
        qg = jnp.dot(xn_c, wqkv_ref[g * 3 + 0], preferred_element_type=f32).astype(cdt)
        kg = jnp.dot(xn_c, wqkv_ref[g * 3 + 1], preferred_element_type=f32).astype(cdt)
        vg = jnp.dot(xn_c, wqkv_ref[g * 3 + 2], preferred_element_type=f32).astype(cdt)
        outs = []
        for j in range(heads_per_group):                   # small static inner loop (<= 128/D)
            sl = slice(j * D, (j + 1) * D)
            s = jnp.dot(qg[:, sl], kg[:, sl].T, preferred_element_type=f32)  # (Np, Np)
            if need_mask:
                s = jnp.where(key_mask, s, -1e30)
            s = s - jnp.max(s, axis=-1, keepdims=True)
            p = jnp.exp(s)                                 # f32 (EUP)
            denom = jnp.sum(p, axis=-1, keepdims=True)
            o = jnp.dot(p.astype(cdt), vg[:, sl], preferred_element_type=f32)
            # deferred softmax normalization on the narrow output (EUP reciprocal)
            outs.append(o * pl.reciprocal(denom, approx=True))
        # 128-lane (GD-wide) concatenated group tile feeds the proj matmul
        # directly -> no sub-128-lane masked stores.
        o_group = outs[0] if heads_per_group == 1 else jnp.concatenate(outs, axis=-1)
        acc_ref[...] += jnp.dot(o_group.astype(cdt), wproj_ref[g],
                                preferred_element_type=f32)
        return carry

    if num_groups == 1:
        head_group_body(0, 0)
    else:
        lax.fori_loop(0, num_groups, head_group_body, 0,
                      unroll=2 if num_groups % 2 == 0 else 1)

    # ---- residual 1, norm2, chunked MLP --------------------------------------
    x2 = x_ref[0].astype(f32) + acc_ref[...] + bproj_ref[...].astype(f32)
    x2_ref[...] = x2
    xn2 = _layernorm(x2, g2_ref[...].astype(f32), b2_ref[...].astype(f32))
    xn_ref[...] = xn2.astype(cdt)                          # reuse staging scratch
    acc_ref[...] = jnp.zeros_like(acc_ref)                 # reuse as MLP accumulator

    def mlp_body(c, carry):
        xn2_c = xn_ref[...]                                # per-chunk load
        h1 = jnp.dot(xn2_c, wfc1_ref[c], preferred_element_type=f32)
        h1 = h1 + bfc1_ref[c].astype(f32)                  # (Np, hc)
        h1 = _gelu_exact(h1)                               # f32 (gate folded into wfc2)
        acc_ref[...] += jnp.dot(h1.astype(cdt), wfc2_ref[c],
                                preferred_element_type=f32)
        return carry

    if num_hchunks == 1:
        mlp_body(0, 0)
    else:
        lax.fori_loop(0, num_hchunks, mlp_body, 0,
                      unroll=2 if num_hchunks % 2 == 0 else 1)

    out = x2_ref[...] + acc_ref[...] + bfc2_ref[...].astype(f32)
    out_ref[0] = out.astype(out_ref.dtype)


def _prepare_params(params, *, num_heads, heads_per_group, h_chunk, compute_dtype):
    """Fold gates + attention scale into the weights, reshape into the
    group/chunk-leading layouts the kernel indexes with dynamic leading
    indices, and cast matmul weights to the compute dtype."""
    C = params["wqkv"].shape[0]
    H = params["wfc1"].shape[1]
    D = C // num_heads
    GD = heads_per_group * D
    ng = num_heads // heads_per_group
    nc = H // h_chunk
    scale = D ** (-0.5)

    gate_a = params["gate_attn"].reshape(-1).astype(jnp.float32)   # (C,)
    gate_m = params["gate_mlp"].reshape(-1).astype(jnp.float32)    # (H,)

    # fold q/k/v gate into all columns, attention scale into the q columns.
    wqkv = params["wqkv"].astype(jnp.float32) * jnp.tile(gate_a, 3)[None, :]
    wqkv = wqkv.at[:, :C].multiply(scale)
    # (C, 3C) -> (num_groups, 3, C, GD) -> (3*num_groups, C, GD); index g*3+part
    wqkv_r = (wqkv.reshape(C, 3, ng, GD).transpose(2, 1, 0, 3)
              .reshape(ng * 3, C, GD).astype(compute_dtype))

    wproj_r = (params["wproj"].astype(jnp.float32)
               .reshape(ng, GD, C).astype(compute_dtype))

    wfc1_r = (params["wfc1"].astype(jnp.float32).reshape(C, nc, h_chunk)
              .transpose(1, 0, 2).astype(compute_dtype))
    bfc1_r = params["bfc1"].astype(jnp.float32).reshape(nc, 1, h_chunk)

    wfc2 = params["wfc2"].astype(jnp.float32) * gate_m[:, None]    # fold mlp gate
    wfc2_r = wfc2.reshape(nc, h_chunk, C).astype(compute_dtype)

    return {
        "g1": params["g1"].astype(jnp.float32), "b1": params["b1"].astype(jnp.float32),
        "wqkv": wqkv_r,
        "wproj": wproj_r, "bproj": params["bproj"].astype(jnp.float32),
        "g2": params["g2"].astype(jnp.float32), "b2": params["b2"].astype(jnp.float32),
        "wfc1": wfc1_r, "bfc1": bfc1_r,
        "wfc2": wfc2_r, "bfc2": params["bfc2"].astype(jnp.float32),
    }


def _vmem_cap_bytes():
    """Per-generation scoped-VMEM cap."""
    kind = ""
    try:
        kind = jax.devices()[0].device_kind.lower()
    except Exception:
        pass
    if "v7" in kind:
        return 48 * 1024 * 1024      # 64 MiB physical per TC: leave headroom
    if "v5" in kind or "v6" in kind:
        return 100 * 1024 * 1024     # 128 MiB physical VMEM
    return 64 * 1024 * 1024


def vit_block(x, params, *, num_heads, compute_dtype=jnp.bfloat16):
    B, N, C = x.shape
    H = params["wfc1"].shape[1]
    D = C // num_heads

    # head group: as many heads as fit 128 lanes -> lane-dense MXU tiles.
    heads_per_group = _largest_divisor_at_most(num_heads, max(1, 128 // D))
    GD = heads_per_group * D
    num_groups = num_heads // heads_per_group
    # MLP hidden chunk (<=512 columns): GELU of chunk i overlaps fc matmuls of i+1.
    h_chunk = _largest_divisor_at_most(H, 512)

    p = _prepare_params(params, num_heads=num_heads,
                        heads_per_group=heads_per_group,
                        h_chunk=h_chunk, compute_dtype=compute_dtype)

    # Pad tokens to a sublane/lane-friendly size; padded key columns are
    # masked in the kernel softmax, padded rows are stripped afterwards.
    N_pad = _round_up(N, 8) if N < 128 else _round_up(N, 128)
    x_p = x if N_pad == N else jnp.pad(x, ((0, 0), (0, N_pad - N), (0, 0)))

    kernel = functools.partial(block_kernel, num_heads=num_heads, head_dim=D,
                               heads_per_group=heads_per_group, n_valid=N)

    w_item = jnp.dtype(compute_dtype).itemsize
    x_item = jnp.dtype(x.dtype).itemsize
    weight_bytes = w_item * (p["wqkv"].size + p["wproj"].size +
                             p["wfc1"].size + p["wfc2"].size)
    small_bytes = 2 * 4 * (6 * C + 2 * H)
    io_bytes = 2 * 2 * N_pad * C * x_item                     # x & out, double-buffered
    scratch_bytes = N_pad * C * (w_item + 4 + 4)
    temp_bytes = 4 * (3 * N_pad * GD + heads_per_group * N_pad * N_pad
                      + 2 * N_pad * h_chunk + 8 * N_pad * C)
    vmem_cap = _vmem_cap_bytes()

    def estimate(weight_bufs):
        return (weight_bufs * weight_bytes + small_bytes + io_bytes
                + scratch_bytes + temp_bytes)

    # TODO(synk): for ViT-L/H on v7x, stream wfc1/wfc2 over an extra grid axis
    # (or split attention / MLP into two pallas_calls) so both weight sets
    # never co-reside in the 64 MiB VMEM.
    # TODO(synk): add a token-tile "parallel" grid axis (online softmax over
    # KV) so v7x's two TensorCores both get work when B is small/odd.

    def run(single_buffer_weights):
        def wspec(shape):
            ndim = len(shape)
            idx = lambda b, _n=ndim: (0,) * _n
            if single_buffer_weights:
                # weights are grid-invariant -> a single buffer is enough
                return pl.BlockSpec(shape, idx, pipeline_mode=pl.Buffered(1))
            return pl.BlockSpec(shape, idx)

        in_specs = [
            pl.BlockSpec((1, N_pad, C), lambda b: (b, 0, 0)),       # x
            wspec((1, C)), wspec((1, C)),                           # norm1 gamma/beta
            wspec(p["wqkv"].shape),                                 # grouped qkv weights
            wspec(p["wproj"].shape), wspec((1, C)),                 # grouped proj w, b
            wspec((1, C)), wspec((1, C)),                           # norm2 gamma/beta
            wspec(p["wfc1"].shape), wspec(p["bfc1"].shape),         # chunked fc1 w, b
            wspec(p["wfc2"].shape), wspec((1, C)),                  # chunked fc2 w, b
        ]

        weight_bufs = 1 if single_buffer_weights else 2
        vmem_limit = min(max(32 * 1024 * 1024,
                             int(estimate(weight_bufs) * 1.4) + (2 << 20)),
                         vmem_cap)

        grid_spec = pltpu.PrefetchScalarGridSpec(
            num_scalar_prefetch=0,
            grid=(B,),
            in_specs=in_specs,
            out_specs=pl.BlockSpec((1, N_pad, C), lambda b: (b, 0, 0)),
            scratch_shapes=[
                pltpu.VMEM((N_pad, C), compute_dtype),   # norm1/norm2 output staging
                pltpu.VMEM((N_pad, C), jnp.float32),     # attn-proj / MLP f32 accumulator
                pltpu.VMEM((N_pad, C), jnp.float32),     # residual after attention
            ],
        )

        return pl.pallas_call(
            kernel,
            out_shape=jax.ShapeDtypeStruct((B, N_pad, C), x.dtype),
            grid_spec=grid_spec,
            compiler_params=pltpu.CompilerParams(
                dimension_semantics=("parallel",),       # batch axis -> both TCs on v7x
                vmem_limit_bytes=vmem_limit,
            ),
        )(
            x_p,
            p["g1"], p["b1"],
            p["wqkv"],
            p["wproj"], p["bproj"],
            p["g2"], p["b2"],
            p["wfc1"], p["bfc1"],
            p["wfc2"], p["bfc2"],
        )

    try:
        out = run(single_buffer_weights=True)
    except Exception:
        # Gated fallback (per review): only double-buffer the weights when
        # that still fits this generation's VMEM budget; otherwise fail loudly
        # (a silent double-buffer would blow the 64 MiB VMEM on v7x).
        if estimate(2) * 1.4 > vmem_cap:
            raise
        out = run(single_buffer_weights=False)

    return out if N_pad == N else out[:, :N, :]


def vit_block_reference(x, params, *, num_heads):
    """Pure-JAX (f32) reference replicating the PyTorch Block forward."""
    B, N, C = x.shape
    head_dim = C // num_heads
    scale = head_dim ** (-0.5)

    def ln(v, g, b):
        mu = jnp.mean(v, -1, keepdims=True)
        var = jnp.mean((v - mu) ** 2, -1, keepdims=True)
        return (v - mu) / jnp.sqrt(var + 1e-5) * g + b

    xn = ln(x, params["g1"], params["b1"])
    qkv = xn @ params["wqkv"]                            # (B, N, 3C)
    q, k, v = jnp.split(qkv, 3, axis=-1)
    q = q * params["gate_attn"]
    k = k * params["gate_attn"]
    v = v * params["gate_attn"]
    q = q.reshape(B, N, num_heads, head_dim).transpose(0, 2, 1, 3)
    k = k.reshape(B, N, num_heads, head_dim).transpose(0, 2, 1, 3)
    v = v.reshape(B, N, num_heads, head_dim).transpose(0, 2, 1, 3)
    attn = jnp.einsum("bhnd,bhmd->bhnm", q, k) * scale
    attn = jax.nn.softmax(attn, axis=-1)
    o = jnp.einsum("bhnm,bhmd->bhnd", attn, v)
    o = o.transpose(0, 2, 1, 3).reshape(B, N, C)
    o = o @ params["wproj"] + params["bproj"]
    x = x + o
    xn2 = ln(x, params["g2"], params["b2"])
    h1 = xn2 @ params["wfc1"] + params["bfc1"]
    h1 = 0.5 * h1 * (1.0 + lax.erf(h1 / jnp.sqrt(2.0)))
    h1 = h1 * params["gate_mlp"]
    m = h1 @ params["wfc2"] + params["bfc2"]
    return x + m


def make_params(key, dim, num_heads, mlp_ratio=4.0, dtype=jnp.float32):
    H = int(dim * mlp_ratio)
    ks = jax.random.split(key, 6)
    s = 0.02
    return {
        "g1": jnp.ones((1, dim), dtype),
        "b1": jnp.zeros((1, dim), dtype),
        "wqkv": (jax.random.normal(ks[0], (dim, 3 * dim)) * s).astype(dtype),
        "gate_attn": jnp.ones((1, dim), dtype),
        "wproj": (jax.random.normal(ks[1], (dim, dim)) * s).astype(dtype),
        "bproj": (jax.random.normal(ks[2], (1, dim)) * s).astype(dtype),
        "g2": jnp.ones((1, dim), dtype),
        "b2": jnp.zeros((1, dim), dtype),
        "wfc1": (jax.random.normal(ks[3], (dim, H)) * s).astype(dtype),
        "bfc1": jnp.zeros((1, H), dtype),
        "gate_mlp": jnp.ones((1, H), dtype),
        "wfc2": (jax.random.normal(ks[4], (H, dim)) * s).astype(dtype),
        "bfc2": jnp.zeros((1, dim), dtype),
    }


if __name__ == "__main__":
    num_heads = 4
    key = jax.random.PRNGKey(0)
    kx, kp = jax.random.split(key)

    # (2, 8, 32): aligned tokens, single head-group / single MLP chunk.
    # (2, 10, 32): exercises token padding + masked softmax.
    # (2, 10, 256): head_dim=64 -> 2 heads/group, 2 groups, 2 MLP chunks ->
    #               exercises the fori_loop / grouped-weight / concat paths.
    for (B, N, C) in [(2, 8, 32), (2, 10, 32), (2, 10, 256)]:
        x = jax.random.normal(kx, (B, N, C), dtype=jnp.float32)
        params = make_params(kp, C, num_heads)

        out = vit_block(x, params, num_heads=num_heads)
        out = jax.block_until_ready(out)

        ref = vit_block_reference(x, params, num_heads=num_heads)
        assert out.shape == (B, N, C)
        # bf16 MXU operands -> compare against the f32 reference with a
        # correspondingly loose (but still meaningful) tolerance.
        assert jnp.allclose(out, ref, rtol=2e-2, atol=2e-2), \
            f"mismatch vs JAX reference for shape {(B, N, C)}"

    print("KERNEL_OK")
</pallas_src>

<mosaic_0001>
module attributes {stable_mosaic.version = 11 : i64} {
  func.func @block_kernel(%arg0: i32, %arg1: memref<1x8x32xf32, #tpu.memory_space<vmem>>, %arg2: memref<1x32xf32, #tpu.memory_space<vmem>>, %arg3: memref<1x32xf32, #tpu.memory_space<vmem>>, %arg4: memref<3x32x32xbf16, #tpu.memory_space<vmem>>, %arg5: memref<1x32x32xbf16, #tpu.memory_space<vmem>>, %arg6: memref<1x32xf32, #tpu.memory_space<vmem>>, %arg7: memref<1x32xf32, #tpu.memory_space<vmem>>, %arg8: memref<1x32xf32, #tpu.memory_space<vmem>>, %arg9: memref<1x32x128xbf16, #tpu.memory_space<vmem>>, %arg10: memref<1x1x128xf32, #tpu.memory_space<vmem>>, %arg11: memref<1x128x32xbf16, #tpu.memory_space<vmem>>, %arg12: memref<1x32xf32, #tpu.memory_space<vmem>>, %arg13: memref<1x8x32xf32, #tpu.memory_space<vmem>>, %arg14: memref<8x32xbf16, #tpu.memory_space<vmem>>, %arg15: memref<8x32xf32, #tpu.memory_space<vmem>>, %arg16: memref<8x32xf32, #tpu.memory_space<vmem>>) attributes {dimension_semantics = [#tpu.dimension_semantics<parallel>], iteration_bounds = array<i64: 2>, scalar_prefetch = 0 : i64, scratch_operands = 3 : i64, tpu.core_type = #tpu.core_type<tc>, window_params = [{transform_indices = @transform_0, window_bounds = array<i64: 1, 8, 32>}, {pipeline_mode = #tpu.pipeline_mode<synchronous>, transform_indices = @transform_1, window_bounds = array<i64: 1, 32>}, {pipeline_mode = #tpu.pipeline_mode<synchronous>, transform_indices = @transform_2, window_bounds = array<i64: 1, 32>}, {pipeline_mode = #tpu.pipeline_mode<synchronous>, transform_indices = @transform_3, window_bounds = array<i64: 3, 32, 32>}, {pipeline_mode = #tpu.pipeline_mode<synchronous>, transform_indices = @transform_4, window_bounds = array<i64: 1, 32, 32>}, {pipeline_mode = #tpu.pipeline_mode<synchronous>, transform_indices = @transform_5, window_bounds = array<i64: 1, 32>}, {pipeline_mode = #tpu.pipeline_mode<synchronous>, transform_indices = @transform_6, window_bounds = array<i64: 1, 32>}, {pipeline_mode = #tpu.pipeline_mode<synchronous>, transform_indices = @transform_7, window_bounds = array<i64: 1, 32>}, {pipeline_mode = #tpu.pipeline_mode<synchronous>, transform_indices = @transform_8, window_bounds = array<i64: 1, 32, 128>}, {pipeline_mode = #tpu.pipeline_mode<synchronous>, transform_indices = @transform_9, window_bounds = array<i64: 1, 1, 128>}, {pipeline_mode = #tpu.pipeline_mode<synchronous>, transform_indices = @transform_10, window_bounds = array<i64: 1, 128, 32>}, {pipeline_mode = #tpu.pipeline_mode<synchronous>, transform_indices = @transform_11, window_bounds = array<i64: 1, 32>}, {transform_indices = @transform_12, window_bounds = array<i64: 1, 8, 32>}]} {
    %c0 = arith.constant 0 : index
    %c0_0 = arith.constant 0 : index
    %c0_1 = arith.constant 0 : index
    %0 = vector.load %arg1[%c0, %c0_0, %c0_1] : memref<1x8x32xf32, #tpu.memory_space<vmem>>, vector<1x8x32xf32>
    %1 = vector.shape_cast %0 : vector<1x8x32xf32> to vector<8x32xf32>
    %c0_2 = arith.constant 0 : index
    %c0_3 = arith.constant 0 : index
    %2 = vector.load %arg2[%c0_2, %c0_3] : memref<1x32xf32, #tpu.memory_space<vmem>>, vector<1x32xf32>
    %c0_4 = arith.constant 0 : index
    %c0_5 = arith.constant 0 : index
    %3 = vector.load %arg3[%c0_4, %c0_5] : memref<1x32xf32, #tpu.memory_space<vmem>>, vector<1x32xf32>
    %cst = arith.constant dense<0.000000e+00> : vector<8xf32>
    %4 = vector.multi_reduction <add>, %1, %cst [1] : vector<8x32xf32> to vector<8xf32>
    %5 = vector.shape_cast %4 : vector<8xf32> to vector<8x1xf32>
    %cst_6 = arith.constant 3.200000e+01 : f32
    %6 = vector.broadcast %cst_6 : f32 to vector<8x1xf32>
    %7 = arith.divf %5, %6 : vector<8x1xf32>
    %8 = vector.broadcast %7 : vector<8x1xf32> to vector<8x32xf32>
    %9 = arith.subf %1, %8 : vector<8x32xf32>
    %10 = arith.mulf %9, %9 : vector<8x32xf32>
    %cst_7 = arith.constant dense<0.000000e+00> : vector<8xf32>
    %11 = vector.multi_reduction <add>, %10, %cst_7 [1] : vector<8x32xf32> to vector<8xf32>
    %12 = vector.shape_cast %11 : vector<8xf32> to vector<8x1xf32>
    %cst_8 = arith.constant 3.200000e+01 : f32
    %13 = vector.broadcast %cst_8 : f32 to vector<8x1xf32>
    %14 = arith.divf %12, %13 : vector<8x1xf32>
    %15 = vector.broadcast %7 : vector<8x1xf32> to vector<8x32xf32>
    %16 = arith.subf %1, %15 : vector<8x32xf32>
    %cst_9 = arith.constant 9.99999974E-6 : f32
    %17 = vector.broadcast %cst_9 : f32 to vector<8x1xf32>
    %18 = arith.addf %14, %17 : vector<8x1xf32>
    %19 = math.rsqrt %18 : vector<8x1xf32>
    %20 = vector.broadcast %19 : vector<8x1xf32> to vector<8x32xf32>
    %21 = arith.mulf %16, %20 : vector<8x32xf32>
    %22 = vector.broadcast %2 : vector<1x32xf32> to vector<8x32xf32>
    %23 = arith.mulf %21, %22 : vector<8x32xf32>
    %24 = vector.broadcast %3 : vector<1x32xf32> to vector<8x32xf32>
    %25 = arith.addf %23, %24 : vector<8x32xf32>
    %26 = arith.truncf %25 : vector<8x32xf32> to vector<8x32xbf16>
    %c0_10 = arith.constant 0 : index
    %c0_11 = arith.constant 0 : index
    %27 = vector.load %arg14[%c0_10, %c0_11] : memref<8x32xbf16, #tpu.memory_space<vmem>>, vector<8x32xbf16>
    tpu.vector_store %arg14[%c0_10, %c0_11], %26 {strides = array<i32>} : memref<8x32xbf16, #tpu.memory_space<vmem>>, vector<8x32xbf16>,
    %cst_12 = arith.constant 0.000000e+00 : f32
    %28 = vector.broadcast %cst_12 : f32 to vector<8x32xf32>
    %c0_13 = arith.constant 0 : index
    %c0_14 = arith.constant 0 : index
    %29 = vector.load %arg15[%c0_13, %c0_14] : memref<8x32xf32, #tpu.memory_space<vmem>>, vector<8x32xf32>
    tpu.vector_store %arg15[%c0_13, %c0_14], %28 {strides = array<i32>} : memref<8x32xf32, #tpu.memory_space<vmem>>, vector<8x32xf32>,
    %c0_15 = arith.constant 0 : index
    %c0_16 = arith.constant 0 : index
    %30 = vector.load %arg14[%c0_15, %c0_16] : memref<8x32xbf16, #tpu.memory_space<vmem>>, vector<8x32xbf16>
    %c0_17 = arith.constant 0 : index
    %c0_18 = arith.constant 0 : index
    %c0_19 = arith.constant 0 : index
    %31 = vector.load %arg4[%c0_17, %c0_18, %c0_19] : memref<3x32x32xbf16, #tpu.memory_space<vmem>>, vector<1x32x32xbf16>
    %32 = vector.shape_cast %31 : vector<1x32x32xbf16> to vector<32x32xbf16>
    %cst_20 = arith.constant dense<0.000000e+00> : vector<8x32xf32>
    %33 = tpu.matmul %30, %32, %cst_20 {dimension_numbers = #tpu.dot_dimension_numbers<[1], [0], [0], [1], [0, 0, 1, 1], [], []>} : vector<8x32xbf16>, vector<32x32xbf16>, vector<8x32xf32> -> vector<8x32xf32>
    %34 = arith.truncf %33 : vector<8x32xf32> to vector<8x32xbf16>
    %c1 = arith.constant 1 : index
    %c0_21 = arith.constant 0 : index
    %c0_22 = arith.constant 0 : index
    %35 = vector.load %arg4[%c1, %c0_21, %c0_22] : memref<3x32x32xbf16, #tpu.memory_space<vmem>>, vector<1x32x32xbf16>
    %36 = vector.shape_cast %35 : vector<1x32x32xbf16> to vector<32x32xbf16>
    %cst_23 = arith.constant dense<0.000000e+00> : vector<8x32xf32>
    %37 = tpu.matmul %30, %36, %cst_23 {dimension_numbers = #tpu.dot_dimension_numbers<[1], [0], [0], [1], [0, 0, 1, 1], [], []>} : vector<8x32xbf16>, vector<32x32xbf16>, vector<8x32xf32> -> vector<8x32xf32>
    %38 = arith.truncf %37 : vector<8x32xf32> to vector<8x32xbf16>
    %c2 = arith.constant 2 : index
    %c0_24 = arith.constant 0 : index
    %c0_25 = arith.constant 0 : index
    %39 = vector.load %arg4[%c2, %c0_24, %c0_25] : memref<3x32x32xbf16, #tpu.memory_space<vmem>>, vector<1x32x32xbf16>
    %40 = vector.shape_cast %39 : vector<1x32x32xbf16> to vector<32x32xbf16>
    %cst_26 = arith.constant dense<0.000000e+00> : vector<8x32xf32>
    %41 = tpu.matmul %30, %40, %cst_26 {dimension_numbers = #tpu.dot_dimension_numbers<[1], [0], [0], [1], [0, 0, 1, 1], [], []>} : vector<8x32xbf16>, vector<32x32xbf16>, vector<8x32xf32> -> vector<8x32xf32>
    %42 = arith.truncf %41 : vector<8x32xf32> to vector<8x32xbf16>
    %43 = vector.extract_strided_slice %34 {offsets = [0, 0], sizes = [8, 8], strides = [1, 1]} : vector<8x32xbf16> to vector<8x8xbf16>
    %44 = vector.extract_strided_slice %38 {offsets = [0, 0], sizes = [8, 8], strides = [1, 1]} : vector<8x32xbf16> to vector<8x8xbf16>
    %45 = tpu.transpose %44, [1, 0] : vector<8x8xbf16> -> vector<8x8xbf16>
    %cst_27 = arith.constant dense<0.000000e+00> : vector<8x8xf32>
    %46 = tpu.matmul %43, %45, %cst_27 {dimension_numbers = #tpu.dot_dimension_numbers<[1], [0], [0], [1], [0, 0, 1, 1], [], []>} : vector<8x8xbf16>, vector<8x8xbf16>, vector<8x8xf32> -> vector<8x8xf32>
    %cst_28 = arith.constant dense<0xFF800000> : vector<8xf32>
    %47 = vector.multi_reduction <maximumf>, %46, %cst_28 [1] : vector<8x8xf32> to vector<8xf32>
    %48 = vector.shape_cast %47 : vector<8xf32> to vector<8x1xf32>
    %49 = vector.broadcast %48 : vector<8x1xf32> to vector<8x8xf32>
    %50 = arith.subf %46, %49 : vector<8x8xf32>
    %51 = math.exp %50 : vector<8x8xf32>
    %cst_29 = arith.constant dense<0.000000e+00> : vector<8xf32>
    %52 = vector.multi_reduction <add>, %51, %cst_29 [1] : vector<8x8xf32> to vector<8xf32>
    %53 = vector.shape_cast %52 : vector<8xf32> to vector<8x1xf32>
    %54 = arith.truncf %51 : vector<8x8xf32> to vector<8x8xbf16>
    %55 = vector.extract_strided_slice %42 {offsets = [0, 0], sizes = [8, 8], strides = [1, 1]} : vector<8x32xbf16> to vector<8x8xbf16>
    %cst_30 = arith.constant dense<0.000000e+00> : vector<8x8xf32>
    %56 = tpu.matmul %54, %55, %cst_30 {dimension_numbers = #tpu.dot_dimension_numbers<[1], [0], [0], [1], [0, 0, 1, 1], [], []>} : vector<8x8xbf16>, vector<8x8xbf16>, vector<8x8xf32> -> vector<8x8xf32>
    %57 = tpu.reciprocal %53 {approx = true} : vector<8x1xf32> -> vector<8x1xf32>
    %58 = vector.broadcast %57 : vector<8x1xf32> to vector<8x8xf32>
    %59 = arith.mulf %56, %58 : vector<8x8xf32>
    %60 = vector.extract_strided_slice %34 {offsets = [0, 8], sizes = [8, 8], strides = [1, 1]} : vector<8x32xbf16> to vector<8x8xbf16>
    %61 = vector.extract_strided_slice %38 {offsets = [0, 8], sizes = [8, 8], strides = [1, 1]} : vector<8x32xbf16> to vector<8x8xbf16>
    %62 = tpu.transpose %61, [1, 0] : vector<8x8xbf16> -> vector<8x8xbf16>
    %cst_31 = arith.constant dense<0.000000e+00> : vector<8x8xf32>
    %63 = tpu.matmul %60, %62, %cst_31 {dimension_numbers = #tpu.dot_dimension_numbers<[1], [0], [0], [1], [0, 0, 1, 1], [], []>} : vector<8x8xbf16>, vector<8x8xbf16>, vector<8x8xf32> -> vector<8x8xf32>
    %cst_32 = arith.constant dense<0xFF800000> : vector<8xf32>
    %64 = vector.multi_reduction <maximumf>, %63, %cst_32 [1] : vector<8x8xf32> to vector<8xf32>
    %65 = vector.shape_cast %64 : vector<8xf32> to vector<8x1xf32>
    %66 = vector.broadcast %65 : vector<8x1xf32> to vector<8x8xf32>
    %67 = arith.subf %63, %66 : vector<8x8xf32>
    %68 = math.exp %67 : vector<8x8xf32>
    %cst_33 = arith.constant dense<0.000000e+00> : vector<8xf32>
    %69 = vector.multi_reduction <add>, %68, %cst_33 [1] : vector<8x8xf32> to vector<8xf32>
    %70 = vector.shape_cast %69 : vector<8xf32> to vector<8x1xf32>
    %71 = arith.truncf %68 : vector<8x8xf32> to vector<8x8xbf16>
    %72 = vector.extract_strided_slice %42 {offsets = [0, 8], sizes = [8, 8], strides = [1, 1]} : vector<8x32xbf16> to vector<8x8xbf16>
    %cst_34 = arith.constant dense<0.000000e+00> : vector<8x8xf32>
    %73 = tpu.matmul %71, %72, %cst_34 {dimension_numbers = #tpu.dot_dimension_numbers<[1], [0], [0], [1], [0, 0, 1, 1], [], []>} : vector<8x8xbf16>, vector<8x8xbf16>, vector<8x8xf32> -> vector<8x8xf32>
    %74 = tpu.reciprocal %70 {approx = true} : vector<8x1xf32> -> vector<8x1xf32>
    %75 = vector.broadcast %74 : vector<8x1xf32> to vector<8x8xf32>
    %76 = arith.mulf %73, %75 : vector<8x8xf32>
    %77 = vector.extract_strided_slice %34 {offsets = [0, 16], sizes = [8, 8], strides = [1, 1]} : vector<8x32xbf16> to vector<8x8xbf16>
    %78 = vector.extract_strided_slice %38 {offsets = [0, 16], sizes = [8, 8], strides = [1, 1]} : vector<8x32xbf16> to vector<8x8xbf16>
    %79 = tpu.transpose %78, [1, 0] : vector<8x8xbf16> -> vector<8x8xbf16>
    %cst_35 = arith.constant dense<0.000000e+00> : vector<8x8xf32>
    %80 = tpu.matmul %77, %79, %cst_35 {dimension_numbers = #tpu.dot_dimension_numbers<[1], [0], [0], [1], [0, 0, 1, 1], [], []>} : vector<8x8xbf16>, vector<8x8xbf16>, vector<8x8xf32> -> vector<8x8xf32>
    %cst_36 = arith.constant dense<0xFF800000> : vector<8xf32>
    %81 = vector.multi_reduction <maximumf>, %80, %cst_36 [1] : vector<8x8xf32> to vector<8xf32>
    %82 = vector.shape_cast %81 : vector<8xf32> to vector<8x1xf32>
    %83 = vector.broadcast %82 : vector<8x1xf32> to vector<8x8xf32>
    %84 = arith.subf %80, %83 : vector<8x8xf32>
    %85 = math.exp %84 : vector<8x8xf32>
    %cst_37 = arith.constant dense<0.000000e+00> : vector<8xf32>
    %86 = vector.multi_reduction <add>, %85, %cst_37 [1] : vector<8x8xf32> to vector<8xf32>
    %87 = vector.shape_cast %86 : vector<8xf32> to vector<8x1xf32>
    %88 = arith.truncf %85 : vector<8x8xf32> to vector<8x8xbf16>
    %89 = vector.extract_strided_slice %42 {offsets = [0, 16], sizes = [8, 8], strides = [1, 1]} : vector<8x32xbf16> to vector<8x8xbf16>
    %cst_38 = arith.constant dense<0.000000e+00> : vector<8x8xf32>
    %90 = tpu.matmul %88, %89, %cst_38 {dimension_numbers = #tpu.dot_dimension_numbers<[1], [0], [0], [1], [0, 0, 1, 1], [], []>} : vector<8x8xbf16>, vector<8x8xbf16>, vector<8x8xf32> -> vector<8x8xf32>
    %91 = tpu.reciprocal %87 {approx = true} : vector<8x1xf32> -> vector<8x1xf32>
    %92 = vector.broadcast %91 : vector<8x1xf32> to vector<8x8xf32>
    %93 = arith.mulf %90, %92 : vector<8x8xf32>
    %94 = vector.extract_strided_slice %34 {offsets = [0, 24], sizes = [8, 8], strides = [1, 1]} : vector<8x32xbf16> to vector<8x8xbf16>
    %95 = vector.extract_strided_slice %38 {offsets = [0, 24], sizes = [8, 8], strides = [1, 1]} : vector<8x32xbf16> to vector<8x8xbf16>
    %96 = tpu.transpose %95, [1, 0] : vector<8x8xbf16> -> vector<8x8xbf16>
    %cst_39 = arith.constant dense<0.000000e+00> : vector<8x8xf32>
    %97 = tpu.matmul %94, %96, %cst_39 {dimension_numbers = #tpu.dot_dimension_numbers<[1], [0], [0], [1], [0, 0, 1, 1], [], []>} : vector<8x8xbf16>, vector<8x8xbf16>, vector<8x8xf32> -> vector<8x8xf32>
    %cst_40 = arith.constant dense<0xFF800000> : vector<8xf32>
    %98 = vector.multi_reduction <maximumf>, %97, %cst_40 [1] : vector<8x8xf32> to vector<8xf32>
    %99 = vector.shape_cast %98 : vector<8xf32> to vector<8x1xf32>
    %100 = vector.broadcast %99 : vector<8x1xf32> to vector<8x8xf32>
    %101 = arith.subf %97, %100 : vector<8x8xf32>
    %102 = math.exp %101 : vector<8x8xf32>
    %cst_41 = arith.constant dense<0.000000e+00> : vector<8xf32>
    %103 = vector.multi_reduction <add>, %102, %cst_41 [1] : vector<8x8xf32> to vector<8xf32>
    %104 = vector.shape_cast %103 : vector<8xf32> to vector<8x1xf32>
    %105 = arith.truncf %102 : vector<8x8xf32> to vector<8x8xbf16>
    %106 = vector.extract_strided_slice %42 {offsets = [0, 24], sizes = [8, 8], strides = [1, 1]} : vector<8x32xbf16> to vector<8x8xbf16>
    %cst_42 = arith.constant dense<0.000000e+00> : vector<8x8xf32>
    %107 = tpu.matmul %105, %106, %cst_42 {dimension_numbers = #tpu.dot_dimension_numbers<[1], [0], [0], [1], [0, 0, 1, 1], [], []>} : vector<8x8xbf16>, vector<8x8xbf16>, vector<8x8xf32> -> vector<8x8xf32>
    %108 = tpu.reciprocal %104 {approx = true} : vector<8x1xf32> -> vector<8x1xf32>
    %109 = vector.broadcast %108 : vector<8x1xf32> to vector<8x8xf32>
    %110 = arith.mulf %107, %109 : vector<8x8xf32>
    %111 = tpu.concatenate %59, %76, %93, %110 in 1 : vector<8x8xf32>, vector<8x8xf32>, vector<8x8xf32>, vector<8x8xf32> -> vector<8x32xf32>
    %c0_43 = arith.constant 0 : index
    %c0_44 = arith.constant 0 : index
    %112 = vector.load %arg15[%c0_43, %c0_44] : memref<8x32xf32, #tpu.memory_space<vmem>>, vector<8x32xf32>
    %113 = arith.truncf %111 : vector<8x32xf32> to vector<8x32xbf16>
    %c0_45 = arith.constant 0 : index
    %c0_46 = arith.constant 0 : index
    %c0_47 = arith.constant 0 : index
    %114 = vector.load %arg5[%c0_45, %c0_46, %c0_47] : memref<1x32x32xbf16, #tpu.memory_space<vmem>>, vector<1x32x32xbf16>
    %115 = vector.shape_cast %114 : vector<1x32x32xbf16> to vector<32x32xbf16>
    %cst_48 = arith.constant dense<0.000000e+00> : vector<8x32xf32>
    %116 = tpu.matmul %113, %115, %cst_48 {dimension_numbers = #tpu.dot_dimension_numbers<[1], [0], [0], [1], [0, 0, 1, 1], [], []>} : vector<8x32xbf16>, vector<32x32xbf16>, vector<8x32xf32> -> vector<8x32xf32>
    %117 = arith.addf %112, %116 : vector<8x32xf32>
    %c0_49 = arith.constant 0 : index
    %c0_50 = arith.constant 0 : index
    %118 = vector.load %arg15[%c0_49, %c0_50] : memref<8x32xf32, #tpu.memory_space<vmem>>, vector<8x32xf32>
    tpu.vector_store %arg15[%c0_49, %c0_50], %117 {strides = array<i32>} : memref<8x32xf32, #tpu.memory_space<vmem>>, vector<8x32xf32>,
    %c0_51 = arith.constant 0 : index
    %c0_52 = arith.constant 0 : index
    %c0_53 = arith.constant 0 : index
    %119 = vector.load %arg1[%c0_51, %c0_52, %c0_53] : memref<1x8x32xf32, #tpu.memory_space<vmem>>, vector<1x8x32xf32>
    %120 = vector.shape_cast %119 : vector<1x8x32xf32> to vector<8x32xf32>
    %c0_54 = arith.constant 0 : index
    %c0_55 = arith.constant 0 : index
    %121 = vector.load %arg15[%c0_54, %c0_55] : memref<8x32xf32, #tpu.memory_space<vmem>>, vector<8x32xf32>
    %122 = arith.addf %120, %121 : vector<8x32xf32>
    %c0_56 = arith.constant 0 : index
    %c0_57 = arith.constant 0 : index
    %123 = vector.load %arg6[%c0_56, %c0_57] : memref<1x32xf32, #tpu.memory_space<vmem>>, vector<1x32xf32>
    %124 = vector.broadcast %123 : vector<1x32xf32> to vector<8x32xf32>
    %125 = arith.addf %122, %124 : vector<8x32xf32>
    %c0_58 = arith.constant 0 : index
    %c0_59 = arith.constant 0 : index
    %126 = vector.load %arg16[%c0_58, %c0_59] : memref<8x32xf32, #tpu.memory_space<vmem>>, vector<8x32xf32>
    tpu.vector_store %arg16[%c0_58, %c0_59], %125 {strides = array<i32>} : memref<8x32xf32, #tpu.memory_space<vmem>>, vector<8x32xf32>,
    %c0_60 = arith.constant 0 : index
    %c0_61 = arith.constant 0 : index
    %127 = vector.load %arg7[%c0_60, %c0_61] : memref<1x32xf32, #tpu.memory_space<vmem>>, vector<1x32xf32>
    %c0_62 = arith.constant 0 : index
    %c0_63 = arith.constant 0 : index
    %128 = vector.load %arg8[%c0_62, %c0_63] : memref<1x32xf32, #tpu.memory_space<vmem>>, vector<1x32xf32>
    %cst_64 = arith.constant dense<0.000000e+00> : vector<8xf32>
    %129 = vector.multi_reduction <add>, %125, %cst_64 [1] : vector<8x32xf32> to vector<8xf32>
    %130 = vector.shape_cast %129 : vector<8xf32> to vector<8x1xf32>
    %cst_65 = arith.constant 3.200000e+01 : f32
    %131 = vector.broadcast %cst_65 : f32 to vector<8x1xf32>
    %132 = arith.divf %130, %131 : vector<8x1xf32>
    %133 = vector.broadcast %132 : vector<8x1xf32> to vector<8x32xf32>
    %134 = arith.subf %125, %133 : vector<8x32xf32>
    %135 = arith.mulf %134, %134 : vector<8x32xf32>
    %cst_66 = arith.constant dense<0.000000e+00> : vector<8xf32>
    %136 = vector.multi_reduction <add>, %135, %cst_66 [1] : vector<8x32xf32> to vector<8xf32>
    %137 = vector.shape_cast %136 : vector<8xf32> to vector<8x1xf32>
    %cst_67 = arith.constant 3.200000e+01 : f32
    %138 = vector.broadcast %cst_67 : f32 to vector<8x1xf32>
    %139 = arith.divf %137, %138 : vector<8x1xf32>
    %140 = vector.broadcast %132 : vector<8x1xf32> to vector<8x32xf32>
    %141 = arith.subf %125, %140 : vector<8x32xf32>
    %cst_68 = arith.constant 9.99999974E-6 : f32
    %142 = vector.broadcast %cst_68 : f32 to vector<8x1xf32>
    %143 = arith.addf %139, %142 : vector<8x1xf32>
    %144 = math.rsqrt %143 : vector<8x1xf32>
    %145 = vector.broadcast %144 : vector<8x1xf32> to vector<8x32xf32>
    %146 = arith.mulf %141, %145 : vector<8x32xf32>
    %147 = vector.broadcast %127 : vector<1x32xf32> to vector<8x32xf32>
    %148 = arith.mulf %146, %147 : vector<8x32xf32>
    %149 = vector.broadcast %128 : vector<1x32xf32> to vector<8x32xf32>
    %150 = arith.addf %148, %149 : vector<8x32xf32>
    %151 = arith.truncf %150 : vector<8x32xf32> to vector<8x32xbf16>
    %c0_69 = arith.constant 0 : index
    %c0_70 = arith.constant 0 : index
    %152 = vector.load %arg14[%c0_69, %c0_70] : memref<8x32xbf16, #tpu.memory_space<vmem>>, vector<8x32xbf16>
    tpu.vector_store %arg14[%c0_69, %c0_70], %151 {strides = array<i32>} : memref<8x32xbf16, #tpu.memory_space<vmem>>, vector<8x32xbf16>,
    %cst_71 = arith.constant 0.000000e+00 : f32
    %153 = vector.broadcast %cst_71 : f32 to vector<8x32xf32>
    %c0_72 = arith.constant 0 : index
    %c0_73 = arith.constant 0 : index
    %154 = vector.load %arg15[%c0_72, %c0_73] : memref<8x32xf32, #tpu.memory_space<vmem>>, vector<8x32xf32>
    tpu.vector_store %arg15[%c0_72, %c0_73], %153 {strides = array<i32>} : memref<8x32xf32, #tpu.memory_space<vmem>>, vector<8x32xf32>,
    %c0_74 = arith.constant 0 : index
    %c0_75 = arith.constant 0 : index
    %155 = vector.load %arg14[%c0_74, %c0_75] : memref<8x32xbf16, #tpu.memory_space<vmem>>, vector<8x32xbf16>
    %c0_76 = arith.constant 0 : index
    %c0_77 = arith.constant 0 : index
    %c0_78 = arith.constant 0 : index
    %156 = vector.load %arg9[%c0_76, %c0_77, %c0_78] : memref<1x32x128xbf16, #tpu.memory_space<vmem>>, vector<1x32x128xbf16>
    %157 = vector.shape_cast %156 : vector<1x32x128xbf16> to vector<32x128xbf16>
    %cst_79 = arith.constant dense<0.000000e+00> : vector<8x128xf32>
    %158 = tpu.matmul %155, %157, %cst_79 {dimension_numbers = #tpu.dot_dimension_numbers<[1], [0], [0], [1], [0, 0, 1, 1], [], []>} : vector<8x32xbf16>, vector<32x128xbf16>, vector<8x128xf32> -> vector<8x128xf32>
    %c0_80 = arith.constant 0 : index
    %c0_81 = arith.constant 0 : index
    %c0_82 = arith.constant 0 : index
    %159 = vector.load %arg10[%c0_80, %c0_81, %c0_82] : memref<1x1x128xf32, #tpu.memory_space<vmem>>, vector<1x1x128xf32>
    %160 = vector.shape_cast %159 : vector<1x1x128xf32> to vector<1x128xf32>
    %161 = vector.broadcast %160 : vector<1x128xf32> to vector<8x128xf32>
    %162 = arith.addf %158, %161 : vector<8x128xf32>
    %cst_83 = arith.constant 5.000000e-01 : f32
    %163 = vector.broadcast %cst_83 : f32 to vector<8x128xf32>
    %164 = arith.mulf %163, %162 : vector<8x128xf32>
    %cst_84 = arith.constant 0.707106769 : f32
    %165 = vector.broadcast %cst_84 : f32 to vector<8x128xf32>
    %166 = arith.mulf %162, %165 : vector<8x128xf32>
    %167 = math.erf %166 : vector<8x128xf32>
    %cst_85 = arith.constant 1.000000e+00 : f32
    %168 = vector.broadcast %cst_85 : f32 to vector<8x128xf32>
    %169 = arith.addf %168, %167 : vector<8x128xf32>
    %170 = arith.mulf %164, %169 : vector<8x128xf32>
    %c0_86 = arith.constant 0 : index
    %c0_87 = arith.constant 0 : index
    %171 = vector.load %arg15[%c0_86, %c0_87] : memref<8x32xf32, #tpu.memory_space<vmem>>, vector<8x32xf32>
    %172 = arith.truncf %170 : vector<8x128xf32> to vector<8x128xbf16>
    %c0_88 = arith.constant 0 : index
    %c0_89 = arith.constant 0 : index
    %c0_90 = arith.constant 0 : index
    %173 = vector.load %arg11[%c0_88, %c0_89, %c0_90] : memref<1x128x32xbf16, #tpu.memory_space<vmem>>, vector<1x128x32xbf16>
    %174 = vector.shape_cast %173 : vector<1x128x32xbf16> to vector<128x32xbf16>
    %cst_91 = arith.constant dense<0.000000e+00> : vector<8x32xf32>
    %175 = tpu.matmul %172, %174, %cst_91 {dimension_numbers = #tpu.dot_dimension_numbers<[1], [0], [0], [1], [0, 0, 1, 1], [], []>} : vector<8x128xbf16>, vector<128x32xbf16>, vector<8x32xf32> -> vector<8x32xf32>
    %176 = arith.addf %171, %175 : vector<8x32xf32>
    %c0_92 = arith.constant 0 : index
    %c0_93 = arith.constant 0 : index
    %177 = vector.load %arg15[%c0_92, %c0_93] : memref<8x32xf32, #tpu.memory_space<vmem>>, vector<8x32xf32>
    tpu.vector_store %arg15[%c0_92, %c0_93], %176 {strides = array<i32>} : memref<8x32xf32, #tpu.memory_space<vmem>>, vector<8x32xf32>,
    %c0_94 = arith.constant 0 : index
    %c0_95 = arith.constant 0 : index
    %178 = vector.load %arg16[%c0_94, %c0_95] : memref<8x32xf32, #tpu.memory_space<vmem>>, vector<8x32xf32>
    %c0_96 = arith.constant 0 : index
    %c0_97 = arith.constant 0 : index
    %179 = vector.load %arg15[%c0_96, %c0_97] : memref<8x32xf32, #tpu.memory_space<vmem>>, vector<8x32xf32>
    %180 = arith.addf %178, %179 : vector<8x32xf32>
    %c0_98 = arith.constant 0 : index
    %c0_99 = arith.constant 0 : index
    %181 = vector.load %arg12[%c0_98, %c0_99] : memref<1x32xf32, #tpu.memory_space<vmem>>, vector<1x32xf32>
    %182 = vector.broadcast %181 : vector<1x32xf32> to vector<8x32xf32>
    %183 = arith.addf %180, %182 : vector<8x32xf32>
    %c0_100 = arith.constant 0 : index
    %c0_101 = arith.constant 0 : index
    %c0_102 = arith.constant 0 : index
    %184 = vector.load %arg13[%c0_100, %c0_101, %c0_102] : memref<1x8x32xf32, #tpu.memory_space<vmem>>, vector<1x8x32xf32>
    %185 = vector.shape_cast %184 : vector<1x8x32xf32> to vector<8x32xf32>
    %186 = vector.shape_cast %183 : vector<8x32xf32> to vector<1x8x32xf32>
    tpu.vector_store %arg13[%c0_100, %c0_101, %c0_102], %186 {strides = array<i32>} : memref<1x8x32xf32, #tpu.memory_space<vmem>>, vector<1x8x32xf32>,
    return
  }
  func.func @transform_0(%arg0: i32) -> (i32, i32, i32) {
    %c0_i32 = arith.constant 0 : i32
    %c0_i32_0 = arith.constant 0 : i32
    %c0_i32_1 = arith.constant 0 : i32
    return %arg0, %c0_i32, %c0_i32_0 : i32, i32, i32
  }
  func.func @transform_1(%arg0: i32) -> (i32, i32) {
    %c0_i32 = arith.constant 0 : i32
    %c0_i32_0 = arith.constant 0 : i32
    %c0_i32_1 = arith.constant 0 : i32
    return %c0_i32, %c0_i32_0 : i32, i32
  }
  func.func @transform_2(%arg0: i32) -> (i32, i32) {
    %c0_i32 = arith.constant 0 : i32
    %c0_i32_0 = arith.constant 0 : i32
    %c0_i32_1 = arith.constant 0 : i32
    return %c0_i32, %c0_i32_0 : i32, i32
  }
  func.func @transform_3(%arg0: i32) -> (i32, i32, i32) {
    %c0_i32 = arith.constant 0 : i32
    %c0_i32_0 = arith.constant 0 : i32
    %c0_i32_1 = arith.constant 0 : i32
    %c0_i32_2 = arith.constant 0 : i32
    return %c0_i32, %c0_i32_0, %c0_i32_1 : i32, i32, i32
  }
  func.func @transform_4(%arg0: i32) -> (i32, i32, i32) {
    %c0_i32 = arith.constant 0 : i32
    %c0_i32_0 = arith.constant 0 : i32
    %c0_i32_1 = arith.constant 0 : i32
    %c0_i32_2 = arith.constant 0 : i32
    return %c0_i32, %c0_i32_0, %c0_i32_1 : i32, i32, i32
  }
  func.func @transform_5(%arg0: i32) -> (i32, i32) {
    %c0_i32 = arith.constant 0 : i32
    %c0_i32_0 = arith.constant 0 : i32
    %c0_i32_1 = arith.constant 0 : i32
    return %c0_i32, %c0_i32_0 : i32, i32
  }
  func.func @transform_6(%arg0: i32) -> (i32, i32) {
    %c0_i32 = arith.constant 0 : i32
    %c0_i32_0 = arith.constant 0 : i32
    %c0_i32_1 = arith.constant 0 : i32
    return %c0_i32, %c0_i32_0 : i32, i32
  }
  func.func @transform_7(%arg0: i32) -> (i32, i32) {
    %c0_i32 = arith.constant 0 : i32
    %c0_i32_0 = arith.constant 0 : i32
    %c0_i32_1 = arith.constant 0 : i32
    return %c0_i32, %c0_i32_0 : i32, i32
  }
  func.func @transform_8(%arg0: i32) -> (i32, i32, i32) {
    %c0_i32 = arith.constant 0 : i32
    %c0_i32_0 = arith.constant 0 : i32
    %c0_i32_1 = arith.constant 0 : i32
    %c0_i32_2 = arith.constant 0 : i32
    return %c0_i32, %c0_i32_0, %c0_i32_1 : i32, i32, i32
  }
  func.func @transform_9(%arg0: i32) -> (i32, i32, i32) {
    %c0_i32 = arith.constant 0 : i32
    %c0_i32_0 = arith.constant 0 : i32
    %c0_i32_1 = arith.constant 0 : i32
    %c0_i32_2 = arith.constant 0 : i32
    return %c0_i32, %c0_i32_0, %c0_i32_1 : i32, i32, i32
  }
  func.func @transform_10(%arg0: i32) -> (i32, i32, i32) {
    %c0_i32 = arith.constant 0 : i32
    %c0_i32_0 = arith.constant 0 : i32
    %c0_i32_1 = arith.constant 0 : i32
    %c0_i32_2 = arith.constant 0 : i32
    return %c0_i32, %c0_i32_0, %c0_i32_1 : i32, i32, i32
  }
  func.func @transform_11(%arg0: i32) -> (i32, i32) {
    %c0_i32 = arith.constant 0 : i32
    %c0_i32_0 = arith.constant 0 : i32
    %c0_i32_1 = arith.constant 0 : i32
    return %c0_i32, %c0_i32_0 : i32, i32
  }
  func.func @transform_12(%arg0: i32) -> (i32, i32, i32) {
    %c0_i32 = arith.constant 0 : i32
    %c0_i32_0 = arith.constant 0 : i32
    %c0_i32_1 = arith.constant 0 : i32
    return %arg0, %c0_i32, %c0_i32_0 : i32, i32, i32
  }
}

module attributes {stable_mosaic.version = 11 : i64} {
  func.func @block_kernel(%arg0: i32, %arg1: memref<1x8x32xf32, #tpu.memory_space<vmem>>, %arg2: memref<1x32xf32, #tpu.memory_space<vmem>>, %arg3: memref<1x32xf32, #tpu.memory_space<vmem>>, %arg4: memref<3x32x32xbf16, #tpu.memory_space<vmem>>, %arg5: memref<1x32x32xbf16, #tpu.memory_space<vmem>>, %arg6: memref<1x32xf32, #tpu.memory_space<vmem>>, %arg7: memref<1x32xf32, #tpu.memory_space<vmem>>, %arg8: memref<1x32xf32, #tpu.memory_space<vmem>>, %arg9: memref<1x32x128xbf16, #tpu.memory_space<vmem>>, %arg10: memref<1x1x128xf32, #tpu.memory_space<vmem>>, %arg11: memref<1x128x32xbf16, #tpu.memory_space<vmem>>, %arg12: memref<1x32xf32, #tpu.memory_space<vmem>>, %arg13: memref<1x8x32xf32, #tpu.memory_space<vmem>>, %arg14: memref<8x32xbf16, #tpu.memory_space<vmem>>, %arg15: memref<8x32xf32, #tpu.memory_space<vmem>>, %arg16: memref<8x32xf32, #tpu.memory_space<vmem>>) attributes {dimension_semantics = [#tpu.dimension_semantics<parallel>], iteration_bounds = array<i64: 2>, scalar_prefetch = 0 : i64, scratch_operands = 3 : i64, tpu.core_type = #tpu.core_type<tc>, window_params = [{transform_indices = @transform_0, window_bounds = array<i64: 1, 8, 32>}, {pipeline_mode = #tpu.pipeline_mode<synchronous>, transform_indices = @transform_1, window_bounds = array<i64: 1, 32>}, {pipeline_mode = #tpu.pipeline_mode<synchronous>, transform_indices = @transform_2, window_bounds = array<i64: 1, 32>}, {pipeline_mode = #tpu.pipeline_mode<synchronous>, transform_indices = @transform_3, window_bounds = array<i64: 3, 32, 32>}, {pipeline_mode = #tpu.pipeline_mode<synchronous>, transform_indices = @transform_4, window_bounds = array<i64: 1, 32, 32>}, {pipeline_mode = #tpu.pipeline_mode<synchronous>, transform_indices = @transform_5, window_bounds = array<i64: 1, 32>}, {pipeline_mode = #tpu.pipeline_mode<synchronous>, transform_indices = @transform_6, window_bounds = array<i64: 1, 32>}, {pipeline_mode = #tpu.pipeline_mode<synchronous>, transform_indices = @transform_7, window_bounds = array<i64: 1, 32>}, {pipeline_mode = #tpu.pipeline_mode<synchronous>, transform_indices = @transform_8, window_bounds = array<i64: 1, 32, 128>}, {pipeline_mode = #tpu.pipeline_mode<synchronous>, transform_indices = @transform_9, window_bounds = array<i64: 1, 1, 128>}, {pipeline_mode = #tpu.pipeline_mode<synchronous>, transform_indices = @transform_10, window_bounds = array<i64: 1, 128, 32>}, {pipeline_mode = #tpu.pipeline_mode<synchronous>, transform_indices = @transform_11, window_bounds = array<i64: 1, 32>}, {transform_indices = @transform_12, window_bounds = array<i64: 1, 8, 32>}]} {
    %c0 = arith.constant 0 : index
    %c0_0 = arith.constant 0 : index
    %c0_1 = arith.constant 0 : index
    %0 = vector.load %arg1[%c0, %c0_0, %c0_1] : memref<1x8x32xf32, #tpu.memory_space<vmem>>, vector<1x8x32xf32>
    %1 = vector.shape_cast %0 : vector<1x8x32xf32> to vector<8x32xf32>
    %c0_2 = arith.constant 0 : index
    %c0_3 = arith.constant 0 : index
    %2 = vector.load %arg2[%c0_2, %c0_3] : memref<1x32xf32, #tpu.memory_space<vmem>>, vector<1x32xf32>
    %c0_4 = arith.constant 0 : index
    %c0_5 = arith.constant 0 : index
    %3 = vector.load %arg3[%c0_4, %c0_5] : memref<1x32xf32, #tpu.memory_space<vmem>>, vector<1x32xf32>
    %cst = arith.constant dense<0.000000e+00> : vector<8xf32>
    %4 = vector.multi_reduction <add>, %1, %cst [1] : vector<8x32xf32> to vector<8xf32>
    %5 = vector.shape_cast %4 : vector<8xf32> to vector<8x1xf32>
    %cst_6 = arith.constant 3.200000e+01 : f32
    %6 = vector.broadcast %cst_6 : f32 to vector<8x1xf32>
    %7 = arith.divf %5, %6 : vector<8x1xf32>
    %8 = vector.broadcast %7 : vector<8x1xf32> to vector<8x32xf32>
    %9 = arith.subf %1, %8 : vector<8x32xf32>
    %10 = arith.mulf %9, %9 : vector<8x32xf32>
    %cst_7 = arith.constant dense<0.000000e+00> : vector<8xf32>
    %11 = vector.multi_reduction <add>, %10, %cst_7 [1] : vector<8x32xf32> to vector<8xf32>
    %12 = vector.shape_cast %11 : vector<8xf32> to vector<8x1xf32>
    %cst_8 = arith.constant 3.200000e+01 : f32
    %13 = vector.broadcast %cst_8 : f32 to vector<8x1xf32>
    %14 = arith.divf %12, %13 : vector<8x1xf32>
    %15 = vector.broadcast %7 : vector<8x1xf32> to vector<8x32xf32>
    %16 = arith.subf %1, %15 : vector<8x32xf32>
    %cst_9 = arith.constant 9.99999974E-6 : f32
    %17 = vector.broadcast %cst_9 : f32 to vector<8x1xf32>
    %18 = arith.addf %14, %17 : vector<8x1xf32>
    %19 = math.rsqrt %18 : vector<8x1xf32>
    %20 = vector.broadcast %19 : vector<8x1xf32> to vector<8x32xf32>
    %21 = arith.mulf %16, %20 : vector<8x32xf32>
    %22 = vector.broadcast %2 : vector<1x32xf32> to vector<8x32xf32>
    %23 = arith.mulf %21, %22 : vector<8x32xf32>
    %24 = vector.broadcast %3 : vector<1x32xf32> to vector<8x32xf32>
    %25 = arith.addf %23, %24 : vector<8x32xf32>
    %26 = arith.truncf %25 : vector<8x32xf32> to vector<8x32xbf16>
    %c0_10 = arith.constant 0 : index
    %c0_11 = arith.constant 0 : index
    %27 = vector.load %arg14[%c0_10, %c0_11] : memref<8x32xbf16, #tpu.memory_space<vmem>>, vector<8x32xbf16>
    tpu.vector_store %arg14[%c0_10, %c0_11], %26 {strides = array<i32>} : memref<8x32xbf16, #tpu.memory_space<vmem>>, vector<8x32xbf16>,
    %cst_12 = arith.constant 0.000000e+00 : f32
    %28 = vector.broadcast %cst_12 : f32 to vector<8x32xf32>
    %c0_13 = arith.constant 0 : index
    %c0_14 = arith.constant 0 : index
    %29 = vector.load %arg15[%c0_13, %c0_14] : memref<8x32xf32, #tpu.memory_space<vmem>>, vector<8x32xf32>
    tpu.vector_store %arg15[%c0_13, %c0_14], %28 {strides = array<i32>} : memref<8x32xf32, #tpu.memory_space<vmem>>, vector<8x32xf32>,
    %c0_15 = arith.constant 0 : index
    %c0_16 = arith.constant 0 : index
    %30 = vector.load %arg14[%c0_15, %c0_16] : memref<8x32xbf16, #tpu.memory_space<vmem>>, vector<8x32xbf16>
    %c0_17 = arith.constant 0 : index
    %c0_18 = arith.constant 0 : index
    %c0_19 = arith.constant 0 : index
    %31 = vector.load %arg4[%c0_17, %c0_18, %c0_19] : memref<3x32x32xbf16, #tpu.memory_space<vmem>>, vector<1x32x32xbf16>
    %32 = vector.shape_cast %31 : vector<1x32x32xbf16> to vector<32x32xbf16>
    %cst_20 = arith.constant dense<0.000000e+00> : vector<8x32xf32>
    %33 = tpu.matmul %30, %32, %cst_20 {dimension_numbers = #tpu.dot_dimension_numbers<[1], [0], [0], [1], [0, 0, 1, 1], [], []>} : vector<8x32xbf16>, vector<32x32xbf16>, vector<8x32xf32> -> vector<8x32xf32>
    %34 = arith.truncf %33 : vector<8x32xf32> to vector<8x32xbf16>
    %c1 = arith.constant 1 : index
    %c0_21 = arith.constant 0 : index
    %c0_22 = arith.constant 0 : index
    %35 = vector.load %arg4[%c1, %c0_21, %c0_22] : memref<3x32x32xbf16, #tpu.memory_space<vmem>>, vector<1x32x32xbf16>
    %36 = vector.shape_cast %35 : vector<1x32x32xbf16> to vector<32x32xbf16>
    %cst_23 = arith.constant dense<0.000000e+00> : vector<8x32xf32>
    %37 = tpu.matmul %30, %36, %cst_23 {dimension_numbers = #tpu.dot_dimension_numbers<[1], [0], [0], [1], [0, 0, 1, 1], [], []>} : vector<8x32xbf16>, vector<32x32xbf16>, vector<8x32xf32> -> vector<8x32xf32>
    %38 = arith.truncf %37 : vector<8x32xf32> to vector<8x32xbf16>
    %c2 = arith.constant 2 : index
    %c0_24 = arith.constant 0 : index
    %c0_25 = arith.constant 0 : index
    %39 = vector.load %arg4[%c2, %c0_24, %c0_25] : memref<3x32x32xbf16, #tpu.memory_space<vmem>>, vector<1x32x32xbf16>
    %40 = vector.shape_cast %39 : vector<1x32x32xbf16> to vector<32x32xbf16>
    %cst_26 = arith.constant dense<0.000000e+00> : vector<8x32xf32>
    %41 = tpu.matmul %30, %40, %cst_26 {dimension_numbers = #tpu.dot_dimension_numbers<[1], [0], [0], [1], [0, 0, 1, 1], [], []>} : vector<8x32xbf16>, vector<32x32xbf16>, vector<8x32xf32> -> vector<8x32xf32>
    %42 = arith.truncf %41 : vector<8x32xf32> to vector<8x32xbf16>
    %43 = vector.extract_strided_slice %34 {offsets = [0, 0], sizes = [8, 8], strides = [1, 1]} : vector<8x32xbf16> to vector<8x8xbf16>
    %44 = vector.extract_strided_slice %38 {offsets = [0, 0], sizes = [8, 8], strides = [1, 1]} : vector<8x32xbf16> to vector<8x8xbf16>
    %45 = tpu.transpose %44, [1, 0] : vector<8x8xbf16> -> vector<8x8xbf16>
    %cst_27 = arith.constant dense<0.000000e+00> : vector<8x8xf32>
    %46 = tpu.matmul %43, %45, %cst_27 {dimension_numbers = #tpu.dot_dimension_numbers<[1], [0], [0], [1], [0, 0, 1, 1], [], []>} : vector<8x8xbf16>, vector<8x8xbf16>, vector<8x8xf32> -> vector<8x8xf32>
    %cst_28 = arith.constant dense<0xFF800000> : vector<8xf32>
    %47 = vector.multi_reduction <maximumf>, %46, %cst_28 [1] : vector<8x8xf32> to vector<8xf32>
    %48 = vector.shape_cast %47 : vector<8xf32> to vector<8x1xf32>
    %49 = vector.broadcast %48 : vector<8x1xf32> to vector<8x8xf32>
    %50 = arith.subf %46, %49 : vector<8x8xf32>
    %51 = math.exp %50 : vector<8x8xf32>
    %cst_29 = arith.constant dense<0.000000e+00> : vector<8xf32>
    %52 = vector.multi_reduction <add>, %51, %cst_29 [1] : vector<8x8xf32> to vector<8xf32>
    %53 = vector.shape_cast %52 : vector<8xf32> to vector<8x1xf32>
    %54 = arith.truncf %51 : vector<8x8xf32> to vector<8x8xbf16>
    %55 = vector.extract_strided_slice %42 {offsets = [0, 0], sizes = [8, 8], strides = [1, 1]} : vector<8x32xbf16> to vector<8x8xbf16>
    %cst_30 = arith.constant dense<0.000000e+00> : vector<8x8xf32>
    %56 = tpu.matmul %54, %55, %cst_30 {dimension_numbers = #tpu.dot_dimension_numbers<[1], [0], [0], [1], [0, 0, 1, 1], [], []>} : vector<8x8xbf16>, vector<8x8xbf16>, vector<8x8xf32> -> vector<8x8xf32>
    %57 = tpu.reciprocal %53 {approx = true} : vector<8x1xf32> -> vector<8x1xf32>
    %58 = vector.broadcast %57 : vector<8x1xf32> to vector<8x8xf32>
    %59 = arith.mulf %56, %58 : vector<8x8xf32>
    %60 = vector.extract_strided_slice %34 {offsets = [0, 8], sizes = [8, 8], strides = [1, 1]} : vector<8x32xbf16> to vector<8x8xbf16>
    %61 = vector.extract_strided_slice %38 {offsets = [0, 8], sizes = [8, 8], strides = [1, 1]} : vector<8x32xbf16> to vector<8x8xbf16>
    %62 = tpu.transpose %61, [1, 0] : vector<8x8xbf16> -> vector<8x8xbf16>
    %cst_31 = arith.constant dense<0.000000e+00> : vector<8x8xf32>
    %63 = tpu.matmul %60, %62, %cst_31 {dimension_numbers = #tpu.dot_dimension_numbers<[1], [0], [0], [1], [0, 0, 1, 1], [], []>} : vector<8x8xbf16>, vector<8x8xbf16>, vector<8x8xf32> -> vector<8x8xf32>
    %cst_32 = arith.constant dense<0xFF800000> : vector<8xf32>
    %64 = vector.multi_reduction <maximumf>, %63, %cst_32 [1] : vector<8x8xf32> to vector<8xf32>
    %65 = vector.shape_cast %64 : vector<8xf32> to vector<8x1xf32>
    %66 = vector.broadcast %65 : vector<8x1xf32> to vector<8x8xf32>
    %67 = arith.subf %63, %66 : vector<8x8xf32>
    %68 = math.exp %67 : vector<8x8xf32>
    %cst_33 = arith.constant dense<0.000000e+00> : vector<8xf32>
    %69 = vector.multi_reduction <add>, %68, %cst_33 [1] : vector<8x8xf32> to vector<8xf32>
    %70 = vector.shape_cast %69 : vector<8xf32> to vector<8x1xf32>
    %71 = arith.truncf %68 : vector<8x8xf32> to vector<8x8xbf16>
    %72 = vector.extract_strided_slice %42 {offsets = [0, 8], sizes = [8, 8], strides = [1, 1]} : vector<8x32xbf16> to vector<8x8xbf16>
    %cst_34 = arith.constant dense<0.000000e+00> : vector<8x8xf32>
    %73 = tpu.matmul %71, %72, %cst_34 {dimension_numbers = #tpu.dot_dimension_numbers<[1], [0], [0], [1], [0, 0, 1, 1], [], []>} : vector<8x8xbf16>, vector<8x8xbf16>, vector<8x8xf32> -> vector<8x8xf32>
    %74 = tpu.reciprocal %70 {approx = true} : vector<8x1xf32> -> vector<8x1xf32>
    %75 = vector.broadcast %74 : vector<8x1xf32> to vector<8x8xf32>
    %76 = arith.mulf %73, %75 : vector<8x8xf32>
    %77 = vector.extract_strided_slice %34 {offsets = [0, 16], sizes = [8, 8], strides = [1, 1]} : vector<8x32xbf16> to vector<8x8xbf16>
    %78 = vector.extract_strided_slice %38 {offsets = [0, 16], sizes = [8, 8], strides = [1, 1]} : vector<8x32xbf16> to vector<8x8xbf16>
    %79 = tpu.transpose %78, [1, 0] : vector<8x8xbf16> -> vector<8x8xbf16>
    %cst_35 = arith.constant dense<0.000000e+00> : vector<8x8xf32>
    %80 = tpu.matmul %77, %79, %cst_35 {dimension_numbers = #tpu.dot_dimension_numbers<[1], [0], [0], [1], [0, 0, 1, 1], [], []>} : vector<8x8xbf16>, vector<8x8xbf16>, vector<8x8xf32> -> vector<8x8xf32>
    %cst_36 = arith.constant dense<0xFF800000> : vector<8xf32>
    %81 = vector.multi_reduction <maximumf>, %80, %cst_36 [1] : vector<8x8xf32> to vector<8xf32>
    %82 = vector.shape_cast %81 : vector<8xf32> to vector<8x1xf32>
    %83 = vector.broadcast %82 : vector<8x1xf32> to vector<8x8xf32>
    %84 = arith.subf %80, %83 : vector<8x8xf32>
    %85 = math.exp %84 : vector<8x8xf32>
    %cst_37 = arith.constant dense<0.000000e+00> : vector<8xf32>
    %86 = vector.multi_reduction <add>, %85, %cst_37 [1] : vector<8x8xf32> to vector<8xf32>
    %87 = vector.shape_cast %86 : vector<8xf32> to vector<8x1xf32>
    %88 = arith.truncf %85 : vector<8x8xf32> to vector<8x8xbf16>
    %89 = vector.extract_strided_slice %42 {offsets = [0, 16], sizes = [8, 8], strides = [1, 1]} : vector<8x32xbf16> to vector<8x8xbf16>
    %cst_38 = arith.constant dense<0.000000e+00> : vector<8x8xf32>
    %90 = tpu.matmul %88, %89, %cst_38 {dimension_numbers = #tpu.dot_dimension_numbers<[1], [0], [0], [1], [0, 0, 1, 1], [], []>} : vector<8x8xbf16>, vector<8x8xbf16>, vector<8x8xf32> -> vector<8x8xf32>
    %91 = tpu.reciprocal %87 {approx = true} : vector<8x1xf32> -> vector<8x1xf32>
    %92 = vector.broadcast %91 : vector<8x1xf32> to vector<8x8xf32>
    %93 = arith.mulf %90, %92 : vector<8x8xf32>
    %94 = vector.extract_strided_slice %34 {offsets = [0, 24], sizes = [8, 8], strides = [1, 1]} : vector<8x32xbf16> to vector<8x8xbf16>
    %95 = vector.extract_strided_slice %38 {offsets = [0, 24], sizes = [8, 8], strides = [1, 1]} : vector<8x32xbf16> to vector<8x8xbf16>
    %96 = tpu.transpose %95, [1, 0] : vector<8x8xbf16> -> vector<8x8xbf16>
    %cst_39 = arith.constant dense<0.000000e+00> : vector<8x8xf32>
    %97 = tpu.matmul %94, %96, %cst_39 {dimension_numbers = #tpu.dot_dimension_numbers<[1], [0], [0], [1], [0, 0, 1, 1], [], []>} : vector<8x8xbf16>, vector<8x8xbf16>, vector<8x8xf32> -> vector<8x8xf32>
    %cst_40 = arith.constant dense<0xFF800000> : vector<8xf32>
    %98 = vector.multi_reduction <maximumf>, %97, %cst_40 [1] : vector<8x8xf32> to vector<8xf32>
    %99 = vector.shape_cast %98 : vector<8xf32> to vector<8x1xf32>
    %100 = vector.broadcast %99 : vector<8x1xf32> to vector<8x8xf32>
    %101 = arith.subf %97, %100 : vector<8x8xf32>
    %102 = math.exp %101 : vector<8x8xf32>
    %cst_41 = arith.constant dense<0.000000e+00> : vector<8xf32>
    %103 = vector.multi_reduction <add>, %102, %cst_41 [1] : vector<8x8xf32> to vector<8xf32>
    %104 = vector.shape_cast %103 : vector<8xf32> to vector<8x1xf32>
    %105 = arith.truncf %102 : vector<8x8xf32> to vector<8x8xbf16>
    %106 = vector.extract_strided_slice %42 {offsets = [0, 24], sizes = [8, 8], strides = [1, 1]} : vector<8x32xbf16> to vector<8x8xbf16>
    %cst_42 = arith.constant dense<0.000000e+00> : vector<8x8xf32>
    %107 = tpu.matmul %105, %106, %cst_42 {dimension_numbers = #tpu.dot_dimension_numbers<[1], [0], [0], [1], [0, 0, 1, 1], [], []>} : vector<8x8xbf16>, vector<8x8xbf16>, vector<8x8xf32> -> vector<8x8xf32>
    %108 = tpu.reciprocal %104 {approx = true} : vector<8x1xf32> -> vector<8x1xf32>
    %109 = vector.broadcast %108 : vector<8x1xf32> to vector<8x8xf32>
    %110 = arith.mulf %107, %109 : vector<8x8xf32>
    %111 = tpu.concatenate %59, %76, %93, %110 in 1 : vector<8x8xf32>, vector<8x8xf32>, vector<8x8xf32>, vector<8x8xf32> -> vector<8x32xf32>
    %c0_43 = arith.constant 0 : index
    %c0_44 = arith.constant 0 : index
    %112 = vector.load %arg15[%c0_43, %c0_44] : memref<8x32xf32, #tpu.memory_space<vmem>>, vector<8x32xf32>
    %113 = arith.truncf %111 : vector<8x32xf32> to vector<8x32xbf16>
    %c0_45 = arith.constant 0 : index
    %c0_46 = arith.constant 0 : index
    %c0_47 = arith.constant 0 : index
    %114 = vector.load %arg5[%c0_45, %c0_46, %c0_47] : memref<1x32x32xbf16, #tpu.memory_space<vmem>>, vector<1x32x32xbf16>
    %115 = vector.shape_cast %114 : vector<1x32x32xbf16> to vector<32x32xbf16>
    %cst_48 = arith.constant dense<0.000000e+00> : vector<8x32xf32>
    %116 = tpu.matmul %113, %115, %cst_48 {dimension_numbers = #tpu.dot_dimension_numbers<[1], [0], [0], [1], [0, 0, 1, 1], [], []>} : vector<8x32xbf16>, vector<32x32xbf16>, vector<8x32xf32> -> vector<8x32xf32>
    %117 = arith.addf %112, %116 : vector<8x32xf32>
    %c0_49 = arith.constant 0 : index
    %c0_50 = arith.constant 0 : index
    %118 = vector.load %arg15[%c0_49, %c0_50] : memref<8x32xf32, #tpu.memory_space<vmem>>, vector<8x32xf32>
    tpu.vector_store %arg15[%c0_49, %c0_50], %117 {strides = array<i32>} : memref<8x32xf32, #tpu.memory_space<vmem>>, vector<8x32xf32>,
    %c0_51 = arith.constant 0 : index
    %c0_52 = arith.constant 0 : index
    %c0_53 = arith.constant 0 : index
    %119 = vector.load %arg1[%c0_51, %c0_52, %c0_53] : memref<1x8x32xf32, #tpu.memory_space<vmem>>, vector<1x8x32xf32>
    %120 = vector.shape_cast %119 : vector<1x8x32xf32> to vector<8x32xf32>
    %c0_54 = arith.constant 0 : index
    %c0_55 = arith.constant 0 : index
    %121 = vector.load %arg15[%c0_54, %c0_55] : memref<8x32xf32, #tpu.memory_space<vmem>>, vector<8x32xf32>
    %122 = arith.addf %120, %121 : vector<8x32xf32>
    %c0_56 = arith.constant 0 : index
    %c0_57 = arith.constant 0 : index
    %123 = vector.load %arg6[%c0_56, %c0_57] : memref<1x32xf32, #tpu.memory_space<vmem>>, vector<1x32xf32>
    %124 = vector.broadcast %123 : vector<1x32xf32> to vector<8x32xf32>
    %125 = arith.addf %122, %124 : vector<8x32xf32>
    %c0_58 = arith.constant 0 : index
    %c0_59 = arith.constant 0 : index
    %126 = vector.load %arg16[%c0_58, %c0_59] : memref<8x32xf32, #tpu.memory_space<vmem>>, vector<8x32xf32>
    tpu.vector_store %arg16[%c0_58, %c0_59], %125 {strides = array<i32>} : memref<8x32xf32, #tpu.memory_space<vmem>>, vector<8x32xf32>,
    %c0_60 = arith.constant 0 : index
    %c0_61 = arith.constant 0 : index
    %127 = vector.load %arg7[%c0_60, %c0_61] : memref<1x32xf32, #tpu.memory_space<vmem>>, vector<1x32xf32>
    %c0_62 = arith.constant 0 : index
    %c0_63 = arith.constant 0 : index
    %128 = vector.load %arg8[%c0_62, %c0_63] : memref<1x32xf32, #tpu.memory_space<vmem>>, vector<1x32xf32>
    %cst_64 = arith.constant dense<0.000000e+00> : vector<8xf32>
    %129 = vector.multi_reduction <add>, %125, %cst_64 [1] : vector<8x32xf32> to vector<8xf32>
    %130 = vector.shape_cast %129 : vector<8xf32> to vector<8x1xf32>
    %cst_65 = arith.constant 3.200000e+01 : f32
    %131 = vector.broadcast %cst_65 : f32 to vector<8x1xf32>
    %132 = arith.divf %130, %131 : vector<8x1xf32>
    %133 = vector.broadcast %132 : vector<8x1xf32> to vector<8x32xf32>
    %134 = arith.subf %125, %133 : vector<8x32xf32>
    %135 = arith.mulf %134, %134 : vector<8x32xf32>
    %cst_66 = arith.constant dense<0.000000e+00> : vector<8xf32>
    %136 = vector.multi_reduction <add>, %135, %cst_66 [1] : vector<8x32xf32> to vector<8xf32>
    %137 = vector.shape_cast %136 : vector<8xf32> to vector<8x1xf32>
    %cst_67 = arith.constant 3.200000e+01 : f32
    %138 = vector.broadcast %cst_67 : f32 to vector<8x1xf32>
    %139 = arith.divf %137, %138 : vector<8x1xf32>
    %140 = vector.broadcast %132 : vector<8x1xf32> to vector<8x32xf32>
    %141 = arith.subf %125, %140 : vector<8x32xf32>
    %cst_68 = arith.constant 9.99999974E-6 : f32
    %142 = vector.broadcast %cst_68 : f32 to vector<8x1xf32>
    %143 = arith.addf %139, %142 : vector<8x1xf32>
    %144 = math.rsqrt %143 : vector<8x1xf32>
    %145 = vector.broadcast %144 : vector<8x1xf32> to vector<8x32xf32>
    %146 = arith.mulf %141, %145 : vector<8x32xf32>
    %147 = vector.broadcast %127 : vector<1x32xf32> to vector<8x32xf32>
    %148 = arith.mulf %146, %147 : vector<8x32xf32>
    %149 = vector.broadcast %128 : vector<1x32xf32> to vector<8x32xf32>
    %150 = arith.addf %148, %149 : vector<8x32xf32>
    %151 = arith.truncf %150 : vector<8x32xf32> to vector<8x32xbf16>
    %c0_69 = arith.constant 0 : index
    %c0_70 = arith.constant 0 : index
    %152 = vector.load %arg14[%c0_69, %c0_70] : memref<8x32xbf16, #tpu.memory_space<vmem>>, vector<8x32xbf16>
    tpu.vector_store %arg14[%c0_69, %c0_70], %151 {strides = array<i32>} : memref<8x32xbf16, #tpu.memory_space<vmem>>, vector<8x32xbf16>,
    %cst_71 = arith.constant 0.000000e+00 : f32
    %153 = vector.broadcast %cst_71 : f32 to vector<8x32xf32>
    %c0_72 = arith.constant 0 : index
    %c0_73 = arith.constant 0 : index
    %154 = vector.load %arg15[%c0_72, %c0_73] : memref<8x32xf32, #tpu.memory_space<vmem>>, vector<8x32xf32>
    tpu.vector_store %arg15[%c0_72, %c0_73], %153 {strides = array<i32>} : memref<8x32xf32, #tpu.memory_space<vmem>>, vector<8x32xf32>,
    %c0_74 = arith.constant 0 : index
    %c0_75 = arith.constant 0 : index
    %155 = vector.load %arg14[%c0_74, %c0_75] : memref<8x32xbf16, #tpu.memory_space<vmem>>, vector<8x32xbf16>
    %c0_76 = arith.constant 0 : index
    %c0_77 = arith.constant 0 : index
    %c0_78 = arith.constant 0 : index
    %156 = vector.load %arg9[%c0_76, %c0_77, %c0_78] : memref<1x32x128xbf16, #tpu.memory_space<vmem>>, vector<1x32x128xbf16>
    %157 = vector.shape_cast %156 : vector<1x32x128xbf16> to vector<32x128xbf16>
    %cst_79 = arith.constant dense<0.000000e+00> : vector<8x128xf32>
    %158 = tpu.matmul %155, %157, %cst_79 {dimension_numbers = #tpu.dot_dimension_numbers<[1], [0], [0], [1], [0, 0, 1, 1], [], []>} : vector<8x32xbf16>, vector<32x128xbf16>, vector<8x128xf32> -> vector<8x128xf32>
    %c0_80 = arith.constant 0 : index
    %c0_81 = arith.constant 0 : index
    %c0_82 = arith.constant 0 : index
    %159 = vector.load %arg10[%c0_80, %c0_81, %c0_82] : memref<1x1x128xf32, #tpu.memory_space<vmem>>, vector<1x1x128xf32>
    %160 = vector.shape_cast %159 : vector<1x1x128xf32> to vector<1x128xf32>
    %161 = vector.broadcast %160 : vector<1x128xf32> to vector<8x128xf32>
    %162 = arith.addf %158, %161 : vector<8x128xf32>
    %cst_83 = arith.constant 5.000000e-01 : f32
    %163 = vector.broadcast %cst_83 : f32 to vector<8x128xf32>
    %164 = arith.mulf %163, %162 : vector<8x128xf32>
    %cst_84 = arith.constant 0.707106769 : f32
    %165 = vector.broadcast %cst_84 : f32 to vector<8x128xf32>
    %166 = arith.mulf %162, %165 : vector<8x128xf32>
    %167 = math.erf %166 : vector<8x128xf32>
    %cst_85 = arith.constant 1.000000e+00 : f32
    %168 = vector.broadcast %cst_85 : f32 to vector<8x128xf32>
    %169 = arith.addf %168, %167 : vector<8x128xf32>
    %170 = arith.mulf %164, %169 : vector<8x128xf32>
    %c0_86 = arith.constant 0 : index
    %c0_87 = arith.constant 0 : index
    %171 = vector.load %arg15[%c0_86, %c0_87] : memref<8x32xf32, #tpu.memory_space<vmem>>, vector<8x32xf32>
    %172 = arith.truncf %170 : vector<8x128xf32> to vector<8x128xbf16>
    %c0_88 = arith.constant 0 : index
    %c0_89 = arith.constant 0 : index
    %c0_90 = arith.constant 0 : index
    %173 = vector.load %arg11[%c0_88, %c0_89, %c0_90] : memref<1x128x32xbf16, #tpu.memory_space<vmem>>, vector<1x128x32xbf16>
    %174 = vector.shape_cast %173 : vector<1x128x32xbf16> to vector<128x32xbf16>
    %cst_91 = arith.constant dense<0.000000e+00> : vector<8x32xf32>
    %175 = tpu.matmul %172, %174, %cst_91 {dimension_numbers = #tpu.dot_dimension_numbers<[1], [0], [0], [1], [0, 0, 1, 1], [], []>} : vector<8x128xbf16>, vector<128x32xbf16>, vector<8x32xf32> -> vector<8x32xf32>
    %176 = arith.addf %171, %175 : vector<8x32xf32>
    %c0_92 = arith.constant 0 : index
    %c0_93 = arith.constant 0 : index
    %177 = vector.load %arg15[%c0_92, %c0_93] : memref<8x32xf32, #tpu.memory_space<vmem>>, vector<8x32xf32>
    tpu.vector_store %arg15[%c0_92, %c0_93], %176 {strides = array<i32>} : memref<8x32xf32, #tpu.memory_space<vmem>>, vector<8x32xf32>,
    %c0_94 = arith.constant 0 : index
    %c0_95 = arith.constant 0 : index
    %178 = vector.load %arg16[%c0_94, %c0_95] : memref<8x32xf32, #tpu.memory_space<vmem>>, vector<8x32xf32>
    %c0_96 = arith.constant 0 : index
    %c0_97 = arith.constant 0 : index
    %179 = vector.load %arg15[%c0_96, %c0_97] : memref<8x32xf32, #tpu.memory_space<vmem>>, vector<8x32xf32>
    %180 = arith.addf %178, %179 : vector<8x32xf32>
    %c0_98 = arith.constant 0 : index
    %c0_99 = arith.constant 0 : index
    %181 = vector.load %arg12[%c0_98, %c0_99] : memref<1x32xf32, #tpu.memory_space<vmem>>, vector<1x32xf32>
    %182 = vector.broadcast %181 : vector<1x32xf32> to vector<8x32xf32>
    %183 = arith.addf %180, %182 : vector<8x32xf32>
    %c0_100 = arith.constant 0 : index
    %c0_101 = arith.constant 0 : index
    %c0_102 = arith.constant 0 : index
    %184 = vector.load %arg13[%c0_100, %c0_101, %c0_102] : memref<1x8x32xf32, #tpu.memory_space<vmem>>, vector<1x8x32xf32>
    %185 = vector.shape_cast %184 : vector<1x8x32xf32> to vector<8x32xf32>
    %186 = vector.shape_cast %183 : vector<8x32xf32> to vector<1x8x32xf32>
    tpu.vector_store %arg13[%c0_100, %c0_101, %c0_102], %186 {strides = array<i32>} : memref<1x8x32xf32, #tpu.memory_space<vmem>>, vector<1x8x32xf32>,
    return
  }
  func.func @transform_0(%arg0: i32) -> (i32, i32, i32) {
    %c0_i32 = arith.constant 0 : i32
    %c0_i32_0 = arith.constant 0 : i32
    %c0_i32_1 = arith.constant 0 : i32
    return %arg0, %c0_i32, %c0_i32_0 : i32, i32, i32
  }
  func.func @transform_1(%arg0: i32) -> (i32, i32) {
    %c0_i32 = arith.constant 0 : i32
    %c0_i32_0 = arith.constant 0 : i32
    %c0_i32_1 = arith.constant 0 : i32
    return %c0_i32, %c0_i32_0 : i32, i32
  }
  func.func @transform_2(%arg0: i32) -> (i32, i32) {
    %c0_i32 = arith.constant 0 : i32
    %c0_i32_0 = arith.constant 0 : i32
    %c0_i32_1 = arith.constant 0 : i32
    return %c0_i32, %c0_i32_0 : i32, i32
  }
  func.func @transform_3(%arg0: i32) -> (i32, i32, i32) {
    %c0_i32 = arith.constant 0 : i32
    %c0_i32_0 = arith.constant 0 : i32
    %c0_i32_1 = arith.constant 0 : i32
    %c0_i32_2 = arith.constant 0 : i32
    return %c0_i32, %c0_i32_0, %c0_i32_1 : i32, i32, i32
  }
  func.func @transform_4(%arg0: i32) -> (i32, i32, i32) {
    %c0_i32 = arith.constant 0 : i32
    %c0_i32_0 = arith.constant 0 : i32
    %c0_i32_1 = arith.constant 0 : i32
    %c0_i32_2 = arith.constant 0 : i32
    return %c0_i32, %c0_i32_0, %c0_i32_1 : i32, i32, i32
  }
  func.func @transform_5(%arg0: i32) -> (i32, i32) {
    %c0_i32 = arith.constant 0 : i32
    %c0_i32_0 = arith.constant 0 : i32
    %c0_i32_1 = arith.constant 0 : i32
    return %c0_i32, %c0_i32_0 : i32, i32
  }
  func.func @transform_6(%arg0: i32) -> (i32, i32) {
    %c0_i32 = arith.constant 0 : i32
    %c0_i32_0 = arith.constant 0 : i32
    %c0_i32_1 = arith.constant 0 : i32
    return %c0_i32, %c0_i32_0 : i32, i32
  }
  func.func @transform_7(%arg0: i32) -> (i32, i32) {
    %c0_i32 = arith.constant 0 : i32
    %c0_i32_0 = arith.constant 0 : i32
    %c0_i32_1 = arith.constant 0 : i32
    return %c0_i32, %c0_i32_0 : i32, i32
  }
  func.func @transform_8(%arg0: i32) -> (i32, i32, i32) {
    %c0_i32 = arith.constant 0 : i32
    %c0_i32_0 = arith.constant 0 : i32
    %c0_i32_1 = arith.constant 0 : i32
    %c0_i32_2 = arith.constant 0 : i32
    return %c0_i32, %c0_i32_0, %c0_i32_1 : i32, i32, i32
  }
  func.func @transform_9(%arg0: i32) -> (i32, i32, i32) {
    %c0_i32 = arith.constant 0 : i32
    %c0_i32_0 = arith.constant 0 : i32
    %c0_i32_1 = arith.constant 0 : i32
    %c0_i32_2 = arith.constant 0 : i32
    return %c0_i32, %c0_i32_0, %c0_i32_1 : i32, i32, i32
  }
  func.func @transform_10(%arg0: i32) -> (i32, i32, i32) {
    %c0_i32 = arith.constant 0 : i32
    %c0_i32_0 = arith.constant 0 : i32
    %c0_i32_1 = arith.constant 0 : i32
    %c0_i32_2 = arith.constant 0 : i32
    return %c0_i32, %c0_i32_0, %c0_i32_1 : i32, i32, i32
  }
  func.func @transform_11(%arg0: i32) -> (i32, i32) {
    %c0_i32 = arith.constant 0 : i32
    %c0_i32_0 = arith.constant 0 : i32
    %c0_i32_1 = arith.constant 0 : i32
    return %c0_i32, %c0_i32_0 : i32, i32
  }
  func.func @transform_12(%arg0: i32) -> (i32, i32, i32) {
    %c0_i32 = arith.constant 0 : i32
    %c0_i32_0 = arith.constant 0 : i32
    %c0_i32_1 = arith.constant 0 : i32
    return %arg0, %c0_i32, %c0_i32_0 : i32, i32, i32
  }
}

</mosaic_0001>

<bundles_post_ra>
// kernel: tpu_custom_call.1
= control target key start
LH: loop header
LB: loop body
LE: loop exit
PB: predicated region body
PF: predicated region fallthrough
CT: control target
= control target key end

     0   :  { %17 = vsyncpa [#allocation6], 0  ;;  %s2279_s0 = inlined_call_operand.vmem [shape: f32[2,8,32], index: 0, kind: input, shape index: {}]   ;;  %s2280_s1 = inlined_call_operand.vmem [shape: f32[1,32], index: 1, kind: input, shape index: {}]   ;;  %s2281_s2 = inlined_call_operand.vmem [shape: f32[1,32], index: 2, kind: input, shape index: {}]   ;;  %s2282_s3 = inlined_call_operand.vmem [shape: bf16[3,32,32], index: 3, kind: input, shape index: {}]   ;;  %s2283_s4 = inlined_call_operand.vmem [shape: bf16[1,32,32], index: 4, kind: input, shape index: {}]   ;;  %s2284_s5 = inlined_call_operand.vmem [shape: f32[1,32], index: 5, kind: input, shape index: {}]   ;;  %s2285_s6 = inlined_call_operand.vmem [shape: f32[1,32], index: 6, kind: input, shape index: {}]   ;;  %s2286_s7 = inlined_call_operand.vmem [shape: f32[1,32], index: 7, kind: input, shape index: {}]   ;;  %s2287_s8 = inlined_call_operand.hbm [shape: bf16[1,32,128], index: 8, kind: input, shape index: {}]   ;;  %s2288_s9 = inlined_call_operand.vmem [shape: f32[1,1,128], index: 9, kind: input, shape index: {}]   ;;  %s2289_s10 = inlined_call_operand.vmem [shape: bf16[1,128,32], index: 10, kind: input, shape index: {}]   ;;  %s2290_s11 = inlined_call_operand.vmem [shape: f32[1,32], index: 11, kind: input, shape index: {}]   ;;  %s2291_s12 = inlined_call_operand.hbm [shape: f32[2,8,32], index: 12, kind: output, shape index: {}]  }
   0x1   :  { %18 = vsyncpa [#allocation7], 0 }
   0x2   :  { %20 = vsyncpa [#allocation7 + $0x1], 0  ;;  %s1957_s21 = smov 0   ;;  %s1959_s22 = smov 0  }
   0x3   :  { %s1961_s23 = smov 0   ;;  %s1963_s24 = smov 0  }
   0x4 LB: > { %2296 = sst [smem:[#allocation11_spill]] %s1874_s23  ;;  %s1978_s25 = sadd.s32 4294967295, %s1878_s24   ;;  %s1878_s24 = sphi %s1963_s24, %s2311_s24   ;;  %s1874_s23 = sphi %s1961_s23, %s2308_s23   ;;  %s1870_s22 = sphi %s1959_s22, %s2310_s22   ;;  %s1866_s21 = sphi %s1957_s21, %s2309_s21  }
   0x5   : > { %s1478_s26 = sadd.s32 4294967294, %s1878_s24   ;;  %s1982_s27 = sadd.s32 1, %s1878_s24  }
   0x6   : > { %s290_s28 = sadd.s32 1, %s1874_s23  ;;  %s287_s29 = ssub.s32 %s1878_s24, %s1982_s27 }
   0x7   : > { %p300_p0 = scmp.ne.s32.totalorder %s1874_s23, %s1870_s22  ;;  %p288_p1 = scmp.eq.s32.totalorder %s287_s29, 0 }
   0x8   : > { %p301_p2 = scmp.eq.s32.totalorder %s1978_s25, 1  ;;  %p306_p3 = scmp.ne.s32.totalorder %s1870_s22, %s1866_s21 }
   0x9   : > { %p307_p4 = scmp.eq.s32.totalorder %s1478_s26, 1  ;;  %p1479_p7 = scmp.ge.s32.totalorder %s1878_s24, 1 }
   0xa   : > { %s1993_s30 = scalar_select %p288_p1, %s1874_s23, %s290_s28  }
   0xb   : > { %p1995_p5 = por %p301_p2, %p300_p0  ;;  %p1999_p6 = por %p307_p4, %p306_p3 }
   0xc   : > { %2297 = sst [smem:[#allocation12_spill]] %s1993_s30  ;;  %p314_p8 = scmp.lt.s32.totalorder %s1878_s24, 3 }
   0xd   : > { %s2298_s13 = scalar_select %p1995_p5, 1, 0 }
   0xe   : > { %s2299_s14 = scalar_select %p1999_p6, 1, 0 }
   0xf   : > { %p2293_p9 = scmp.eq.s32.totalorder %s1978_s25, 0  ;;  %p2006_p10 = pnand %p1479_p7, %p314_p8 }
  0x10   : > { %s1880_s16 = smov [#allocation5]   ;;  %s1784_s26 = scalar_lea.hbm %s2287_s8, 256 }
  0x11   : > { %s2300_s15 = scalar_select %p2006_p10, 1, 0 }
  0x12   : > { %s347_s17 = sshll.u32 %s1880_s16, 4  ;;  %p1690_p11 = pneg %p2006_p10  ;;  %s348_s17 = int_to_ptr.vmem [resolvable:$true] %s347_s17 }
  0x13   : > { %p1785_p13 = scmp.ne.s32.totalorder %s2287_s8, %s1784_s26  ;;  %p1791_p3 = scmp.lt.u32.totalorder %s1784_s26, %s2287_s8 }
  0x14   : > { %p2014_p12 = pnand %p2293_p9, %p1690_p11 }
  0x16   : > { %p1786_p0 = pneg %p2014_p12 }
  0x18   : > { %p1787_p1 = pnand %p1786_p0, %p1785_p13 }
  0x1a   : > { %p1788_p2 = pneg %p1787_p1 }
  0x1c   : > { %p1793_p4 = pnand %p1791_p3, %p1788_p2 }
  0x1e   : > { %1796 = shalt.err (!%p1793_p4)
}
  0x1f   : > { %s1797_s23 = scalar_lea.vmem %s348_s17, 256  ;;  %p1805_p9 = scmp.lt.s32.totalorder %s348_s17, %s348_s17 }
  0x20   : > { %p1798_p7 = scmp.ne.s32.totalorder %s348_s17, %s1797_s23  ;;  %p1806_p6 = scmp.lt.s32.totalorder %s1797_s23, %s1797_s23 }
  0x22   : > { %p1800_p8 = pnand %p1798_p7, %p1786_p0  ;;  %p1807_p5 = por %p1806_p6, %p1805_p9 }
  0x24   : > { %p1801_p11 = pneg %p1800_p8 }
  0x26   : > { %p1808_p10 = pnand %p1807_p5, %p1801_p11 }
  0x28   : > { %1811 = shalt.err (!%p1808_p10)
}
  0x29   : > { %s1881_s19 = smov 64   ;;  %s1882_s20 = smov 4  }
  0x2a   : > { %1693 = dma.hbm_to_vmem [thread:$0]  (!%p2014_p12), %s2287_s8, 256, %s348_s17, [#allocation6], %s1881_s19, %s1881_s19, %s1882_s20  }
  0x2b   : > { %p2302_p13 = scmp.ne.s32.totalorder %s2300_s15, 0 }
  0x2c   : > { %p2303_p1 = scmp.eq.s32.totalorder (!%p2302_p13), %s1978_s25, 0 }
  0x2d   : > { %379 = sbr.rel (%p2302_p13) target bundleno = 2470 (0x9a6), region = 68 }
  0x34   : > { %1857 = dma.done.wait (%p2303_p1), [#allocation6], 256   ;;  %p2304_p0 = pmov %p2303_p1 }
  0x35   : > { %p420_p5 = scmp.lt.s32.totalorder %s1978_s25, 1  ;;  %vm428_vm0 = vcmask 261120   ;;  %v1744_v7 = vld [vmem:[%s2282_s3] sm:$0xff]   ;;  %v1883_v8 = vmov 0.0   ;;  %v1745_v9 = vld [vmem:[%s2282_s3 + $0x8] sm:$0xff]   ;;  %vm1884_vm1 = vmmov 0  }
  0x36   : > { %1859 = vsyncadd (%p2304_p0), [#allocation6], 4294967040  ;;  %1576 = vmatprep.subr.bf16.mxu0 %v1883_v8  ;;  %460 = vst.msk [vmem:[#allocation3] sm:$0xff] %vm428_vm0, %v1883_v8  ;;  %1600 = vmatprep.subr.bf16.mxu1 %v1883_v8  ;;  %v1486_v14 = vld [vmem:[%s2280_s1] ss:$0 sm:$0xff]  ;;  %vm458_vm2 = vcmask 257024  }
  0x37   : > { %s421_s23 = scalar_select %p420_p5, %s1978_s25, 1  ;;  %1577 = vmatpush3.bf16.msra.mxu0 %v1744_v7  ;;  %1580 = vmatprep.mubr.msk.bf16.mxu0 %vm1884_vm1, %v1883_v8  ;;  %v1487_v16 = vld [vmem:[%s2281_s2] ss:$0 sm:$0xff]  ;;  %v1746_v20 = vld [vmem:[%s2282_s3 + $0x10] sm:$0xff]   ;;  %v1747_v22 = vld [vmem:[%s2282_s3 + $0x18] sm:$0xff]   ;;  %vm638_vm3 = vcmask 64512  }
  0x38   : > { %1578 = vmatprep.subr.bf16.mxu0 %v1883_v8  ;;  %1602 = vmatprep.mubr.msk.bf16.mxu1 %vm1884_vm1, %v1883_v8  ;;  %v1748_v23 = vld [vmem:[%s2282_s3 + $0x20] sm:$0xff]   ;;  %v1749_v24 = vld [vmem:[%s2282_s3 + $0x28] sm:$0xff]   ;;  %s1885_s29 = smov 112   ;;  %vm698_vm4 = vcmask 1043456   ;;  %s1889_s19 = smov 16   ;;  %vm1090_vm5 = vcmask 130048  }
  0x39   : > { %s1485_s30 = sshll.u32 %s421_s23, 3  ;;  %s1886_s23 = smov 120   ;;  %vm1092_vm6 = vcmask 195584  }
  0x3a   : > { %s423_s16 = scalar_lea.vmem %s2279_s0, %s1485_s30  ;;  %s1887_s30 = smov 104  }
  0x3b   : > { %v2045_v0 = vld [vmem:[%s423_s16] sm:$0xff]  ;;  %1579 = vmatpush3.bf16.msra.mxu0 %v1745_v9  ;;  %s1888_s16 = smov 8   ;;  %s1890_s20 = smov 24  }
  0x3c   : > { %v429_v1 = vsel %vm428_vm0, %v2045_v0, 0.0  ;;  %1584 = vmatprep.subr.bf16.mxu0 %v1883_v8  ;;  %p2305_p9 = scmp.ne.s32.totalorder %s2298_s13, 0 }
  0x3d   : > { %430 = vadd.xlane.f32.xlu0 %v429_v1 }
  0xca   : > { %v431_v2 = vpop.xlane.xlu0 %430 }
  0xcb   : > { %v433_v3 = vmul.f32 0.03125, %v431_v2 }
  0xcd   : > { %v434_v4 = vsub.f32 %v2045_v0, %v433_v3 }
  0xcf   : > { %v435_v5 = vmul.f32 %v434_v4, %v434_v4 }
  0xd1   : > { %v436_v6 = vsel %vm428_vm0, %v435_v5, 0.0 }
  0xd2   : > { %437 = vadd.xlane.f32.xlu0 %v436_v6 }
 0x15f   : > { %v438_v10 = vpop.xlane.xlu0 %437 }
 0x160   : > { %v439_v11 = vmul.f32 0.03125, %v438_v10 }
 0x162   : > { %v440_v12 = vadd.f32 1e-05, %v439_v11 }
 0x164   : > { %1762 = vrsqrt.f32 %v440_v12 }
 0x16e   : > { %v1763_v13 = vpop.eup %1762 }
 0x16f   : > { %v442_v15 = vmul.f32 %v1763_v13, %v434_v4 }
 0x171   : > { %v449_v17 = vmul.f32 %v1486_v14, %v442_v15 }
 0x173   : > { %v456_v18 = vadd.f32 %v1487_v16, %v449_v17 }
 0x175   : > { %v457_v19 = vpack.c.bf16 %v456_v18, %v456_v18 }
 0x177   : > { %459 = vst.msk [vmem:[#allocation2] sm:$0xf] %vm458_vm2, %v457_v19 }
 0x17e   : > { %v461_v21 = vld [vmem:[#allocation2] sm:$0xf] }
 0x17f   : > { %1581 = vmatmul.mubr.msk.bf16.vlgmr.msra.gmra.mrb[0].mxu0 %vm428_vm0, %v461_v21 }
 0x180   : > { %1585 = vmatpush3.bf16.msra.mxu0 %v1746_v20  ;;  %1588 = vmatprep.mubr.msk.bf16.mxu0 %vm1884_vm1, %v1883_v8 }
 0x181   : > { %1586 = vmatprep.subr.bf16.mxu0 %v1883_v8 }
 0x184   : > { %1587 = vmatpush3.bf16.msra.mxu0 %v1747_v22 }
 0x185   : > { %1592 = vmatprep.subr.bf16.mxu0 %v1883_v8 }
 0x187   : > { %1589 = vmatmul.mubr.msk.bf16.vlgmr.msra.gmra.mrb[4].mxu0 %vm428_vm0, %v461_v21 }
 0x188   : > { %1593 = vmatpush3.bf16.msra.mxu0 %v1748_v23  ;;  %1596 = vmatprep.mubr.msk.bf16.mxu0 %vm1884_vm1, %v1883_v8 }
 0x189   : > { %1594 = vmatprep.subr.bf16.mxu0 %v1883_v8 }
 0x18c   : > { %1595 = vmatpush3.bf16.msra.mxu0 %v1749_v24 }
 0x18d   : > { %1606 = vmatprep.subr.bf16.mxu0 %v1883_v8 }
 0x18f   : > { %1597 = vmatmul.mubr.msk.bf16.vlgmr.msra.gmra.mrb[8].mxu0 %vm428_vm0, %v461_v21 }
 0x190   : > { %1608 = vmatprep.mubr.msk.bf16.mxu0 %vm1884_vm1, %v1883_v8 }
 0x252   : > { %v515_v25 = vpop.f32.mrb[0].mxu0 }
 0x253   : > { %v1582_v26 = vpop.f32.mrb[1].mxu0  ;;  %v521_v35 = vpack.c.bf16 %v515_v25, %v515_v25 }
 0x254   : > { %v518_v27 = vpop.f32.mrb[2].mxu0 }
 0x255   : > { %v1583_v28 = vpop.f32.mrb[3].mxu0 }
 0x25a   : > { %v573_v29 = vpop.f32.mrb[4].mxu0 }
 0x25b   : > { %v579_v30 = vpack.c.bf16 %v573_v29, %v573_v29  ;;  %v1590_v31 = vpop.f32.mrb[5].mxu0 }
 0x25c   : > { %v576_v32 = vpop.f32.mrb[6].mxu0 }
 0x25d   : > { %859 = vrot.lane.b32.xlu0 %v579_v30, %s1885_s29  ;;  %748 = vrot.lane.b32.xlu1 %v579_v30, %s1886_s23  ;;  %v1591_v33 = vpop.f32.mrb[7].mxu0  ;;  %v643_v34 = vsel %vm638_vm3, %v579_v30, 0 }
 0x25e   : > { %1601 = vmatpush3.bf16.xpose.msra.mxu1 %v643_v34 }
 0x25f   : > { %1612 = vmatprep.subr.bf16.mxu1 %v1883_v8 }
 0x261   : > { %745 = vrot.lane.b32.xlu1 %v521_v35, %s1886_s23 }
 0x262   : > { %v631_v36 = vpop.f32.mrb[8].mxu0 }
 0x263   : > { %v2104_v37 = vpack.c.bf16 %v631_v36, %v631_v36  ;;  %v1598_v38 = vpop.f32.mrb[9].mxu0 }
 0x264   : > { %v634_v39 = vpop.f32.mrb[10].mxu0 }
 0x265   : > { %857 = vrot.lane.b32.xlu1 %v521_v35, %s1885_s29  ;;  %v1599_v40 = vpop.f32.mrb[11].mxu0  ;;  %1603 = vmatmul.mubr.msk.bf16.vlgmr.msra.gmra.mrb[0].mxu1 %vm638_vm3, %v521_v35  ;;  %v700_v41 = vsel %vm698_vm4, %v2104_v37, 0 }
 0x266   : > { %1607 = vmatpush3.bf16.msra.mxu0 %v700_v41  ;;  %1614 = vmatprep.mubr.msk.bf16.mxu1 %vm1884_vm1, %v1883_v8 }
 0x267   : > { %1618 = vmatprep.subr.bf16.mxu0 %v1883_v8 }
 0x269   : > { %969 = vrot.lane.b32.xlu1 %v579_v30, %s1887_s30 }
 0x26d   : > { %967 = vrot.lane.b32.xlu1 %v521_v35, %s1887_s30 }
 0x2cf   : > { %v749_v42 = vpop.permute.xlu1 %748  ;;  %v860_v45 = vpop.permute.xlu0 %859 }
 0x2d0   : > { %v754_v43 = vsel %vm638_vm3, %v749_v42, 0  ;;  %v865_v47 = vsel %vm638_vm3, %v860_v45, 0  ;;  %v1750_v45 = vld [vmem:[%s2283_s4] sm:$0xff]  }
 0x2d1   : > { %1613 = vmatpush3.bf16.xpose.msra.mxu1 %v754_v43 }
 0x2d2   : > { %1624 = vmatprep.subr.bf16.mxu1 %v1883_v8 }
 0x2d3   : > { %v746_v44 = vpop.permute.xlu1 %745 }
 0x2d7   : > { %v858_v46 = vpop.permute.xlu1 %857 }
 0x2d8   : > { %1615 = vmatmul.mubr.msk.bf16.vlgmr.msra.gmra.mrb[4].mxu1 %vm638_vm3, %v746_v44 }
 0x2d9   : > { %1625 = vmatpush3.bf16.xpose.msra.mxu1 %v865_v47  ;;  %1626 = vmatprep.mubr.msk.bf16.mxu1 %vm1884_vm1, %v1883_v8 }
 0x2da   : > { %1636 = vmatprep.subr.bf16.mxu1 %v1883_v8 }
 0x2db   : > { %v970_v48 = vpop.permute.xlu1 %969 }
 0x2dc   : > { %v975_v49 = vsel %vm638_vm3, %v970_v48, 0 }
 0x2df   : > { %v968_v50 = vpop.permute.xlu1 %967 }
 0x2e0   : > { %1627 = vmatmul.mubr.msk.bf16.vlgmr.msra.gmra.mrb[8].mxu1 %vm638_vm3, %v858_v46 }
 0x2e1   : > { %1637 = vmatpush3.bf16.xpose.msra.mxu1 %v975_v49  ;;  %1638 = vmatprep.mubr.msk.bf16.mxu1 %vm1884_vm1, %v1883_v8 }
 0x2e2   : > { %1648 = vmatprep.subr.bf16.mxu1 %v1883_v8 }
 0x2e8   : > { %1639 = vmatmul.mubr.msk.bf16.vlgmr.msra.gmra.mrb[12].mxu1 %vm638_vm3, %v968_v50 }
 0x2e9   : > { %1652 = vmatprep.mubr.msk.bf16.mxu1 %vm1884_vm1, %v1883_v8  ;;  %1649 = vmatpush3.bf16.msra.mxu1 %v1750_v45  ;;  %v1757_v45 = vld [vmem:[%s2289_s10 + $0x18] sm:$0xff]  }
 0x2ea   : > { %1650 = vmatprep.subr.bf16.mxu1 %v1883_v8 }
 0x338   : > { %v679_v51 = vpop.f32.mrb[0].mxu1 }
 0x339   : > { %v1604_v52 = vpop.f32.mrb[1].mxu1  ;;  %v685_v53 = vsel %vm638_vm3, %v679_v51, -inf }
 0x33a   : > { %686 = vmax.xlane.f32.xlu1 %v685_v53  ;;  %v682_v54 = vpop.f32.mrb[2].mxu1  ;;  %v1751_v53 = vld [vmem:[%s2283_s4 + $0x8] sm:$0xff]  }
 0x33b   : > { %v1605_v55 = vpop.f32.mrb[3].mxu1  ;;  %1651 = vmatpush3.bf16.msra.mxu1 %v1751_v53 }
 0x33c   : > { %1664 = vmatprep.subr.bf16.mxu1 %v1883_v8 }
 0x34b   : > { %917 = vrot.lane.b32.xlu1 %v2104_v37, %s1885_s29 }
 0x3ab   : > { %v790_v56 = vpop.f32.mrb[4].mxu1 }
 0x3ac   : > { %v1616_v57 = vpop.f32.mrb[5].mxu1  ;;  %v796_v58 = vsel %vm638_vm3, %v790_v56, -inf }
 0x3ad   : > { %797 = vmax.xlane.f32.xlu0 %v796_v58  ;;  %v793_v59 = vpop.f32.mrb[6].mxu1 }
 0x3ae   : > { %v1617_v60 = vpop.f32.mrb[7].mxu1 }
 0x3b3   : > { %v901_v61 = vpop.f32.mrb[8].mxu1 }
 0x3b4   : > { %v1628_v62 = vpop.f32.mrb[9].mxu1  ;;  %v907_v63 = vsel %vm638_vm3, %v901_v61, -inf }
 0x3b5   : > { %v904_v1 = vpop.f32.mrb[10].mxu1  ;;  %908 = vmax.xlane.f32.xlu1 %v907_v63 }
 0x3b6   : > { %v1629_v2 = vpop.f32.mrb[11].mxu1 }
 0x3bb   : > { %v1011_v3 = vpop.f32.mrb[12].mxu1 }
 0x3bc   : > { %v1640_v4 = vpop.f32.mrb[13].mxu1  ;;  %v1017_v5 = vsel %vm638_vm3, %v1011_v3, -inf }
 0x3bd   : > { %v1014_v6 = vpop.f32.mrb[14].mxu1  ;;  %1018 = vmax.xlane.f32.xlu1 %v1017_v5 }
 0x3be   : > { %v1641_v7 = vpop.f32.mrb[15].mxu1 }
 0x3c3   : > { %807 = vrot.lane.b32.xlu0 %v2104_v37, %s1886_s23  ;;  %s417_s23 = sand.u32 1, %s1870_s22  }
 0x3c4   : > { %s1394_s29 = scalar_lea.sflag [#allocation7], %s417_s23 }
 0x3c7   : > { %v687_v9 = vpop.xlane.xlu1 %686 }
 0x3c8   : > { %v688_v10 = vsub.f32 %v679_v51, %v687_v9 }
 0x3ca   : > { %v689_v11 = vmul.f32 1.442695, %v688_v10 }
 0x3cb   : > { %v918_v17 = vpop.permute.xlu1 %917 }
 0x3cc   : > { %1764 = vpow2.f32 %v689_v11  ;;  %v923_v28 = vsel %vm698_vm4, %v918_v17, 0 }
 0x3ce   : > { %1027 = vrot.lane.b32.xlu1 %v2104_v37, %s1887_s30  ;;  %s1484_s30 = sshll.u32 %s417_s23, 3 }
 0x3cf   : > { %s419_s15 = scalar_lea.vmem [#allocation8], %s1484_s30 }
 0x3d0   : > { %s1407_s17 = sshll.u32 %s419_s15, 4  ;;  %s2238_s17 = int_to_ptr.vmem [resolvable:$true] %s1407_s17 }
 0x3d1   : > { %s1812_s26 = scalar_lea.vmem %s2238_s17, 128 }
 0x3d2   : > { %p1813_p6 = scmp.ne.s32.totalorder %s2238_s17, %s1812_s26 }
 0x3d4   : > { %p1814_p10 = pnand %p1813_p6, %p2305_p9 }
 0x3d6   : > { %v1765_v12 = vpop.eup %1764  ;;  %p1815_p12 = pneg %p1814_p10 }
 0x3d7   : > { %v694_v13 = vpack.c.bf16 %v1765_v12, %v1765_v12  ;;  %v691_v38 = vsel %vm638_vm3, %v1765_v12, 0.0 }
 0x3d9   : > { %1609 = vmatmul.mubr.msk.bf16.vlgmr.msra.gmra.mrb[12].mxu0 %vm638_vm3, %v694_v13 }
 0x3da   : > { %1620 = vmatprep.mubr.msk.bf16.mxu0 %vm1884_vm1, %v1883_v8 }
 0x43a   : > { %v798_v14 = vpop.xlane.xlu0 %797 }
 0x43b   : > { %v799_v15 = vsub.f32 %v790_v56, %v798_v14  ;;  %v1094_v14 = vld [vmem:[#allocation3] sm:$0xff] }
 0x43d   : > { %v800_v16 = vmul.f32 1.442695, %v799_v15 }
 0x43e   : > { %v808_v18 = vpop.permute.xlu0 %807 }
 0x43f   : > { %1766 = vpow2.f32 %v800_v16  ;;  %v813_v19 = vsel %vm698_vm4, %v808_v18, 0 }
 0x440   : > { %1619 = vmatpush3.bf16.msra.mxu0 %v813_v19 }
 0x441   : > { %1630 = vmatprep.subr.bf16.mxu0 %v1883_v8 }
 0x442   : > { %v909_v20 = vpop.xlane.xlu1 %908 }
 0x443   : > { %v910_v21 = vsub.f32 %v901_v61, %v909_v20 }
 0x445   : > { %v911_v22 = vmul.f32 1.442695, %v910_v21  ;;  %v1516_v21 = vld [vmem:[%s2284_s5] ss:$0 sm:$0xff] }
 0x447   : > { %1768 = vpow2.f32 %v911_v22 }
 0x449   : > { %v1767_v23 = vpop.eup %1766 }
 0x44a   : > { %v1019_v24 = vpop.xlane.xlu1 %1018  ;;  %v802_v25 = vsel %vm638_vm3, %v1767_v23, 0.0  ;;  %v805_v26 = vpack.c.bf16 %v1767_v23, %v1767_v23 }
 0x44b   : > { %v1020_v27 = vsub.f32 %v1011_v3, %v1019_v24  ;;  %803 = vadd.xlane.f32.xlu0 %v802_v25 }
 0x44c   : > { %1621 = vmatmul.mubr.msk.bf16.vlgmr.msra.gmra.mrb[16].mxu0 %vm638_vm3, %v805_v26 }
 0x44d   : > { %v1021_v29 = vmul.f32 1.442695, %v1020_v27  ;;  %1631 = vmatpush3.bf16.msra.mxu0 %v923_v28  ;;  %1632 = vmatprep.mubr.msk.bf16.mxu0 %vm1884_vm1, %v1883_v8 }
 0x44e   : > { %1642 = vmatprep.subr.bf16.mxu0 %v1883_v8  ;;  %v1028_v31 = vpop.permute.xlu1 %1027 }
 0x44f   : > { %1770 = vpow2.f32 %v1021_v29  ;;  %v1033_v34 = vsel %vm698_vm4, %v1028_v31, 0  ;;  %v1753_v31 = vld [vmem:[#allocation5 + $0x8] sm:$0xff]  }
 0x451   : > { %v1769_v30 = vpop.eup %1768 }
 0x452   : > { %v913_v32 = vsel %vm638_vm3, %v1769_v30, 0.0  ;;  %v916_v33 = vpack.c.bf16 %v1769_v30, %v1769_v30  ;;  %v1752_v30 = vld [vmem:[#allocation5] sm:$0xff]  }
 0x453   : > { %914 = vadd.xlane.f32.xlu1 %v913_v32  ;;  %v1755_v32 = vld [vmem:[%s2289_s10 + $0x8] sm:$0xff]  }
 0x454   : > { %1633 = vmatmul.mubr.msk.bf16.vlgmr.msra.gmra.mrb[20].mxu0 %vm638_vm3, %v916_v33  ;;  %v1756_v33 = vld [vmem:[%s2289_s10 + $0x10] sm:$0xff]  }
 0x455   : > { %1643 = vmatpush3.bf16.msra.mxu0 %v1033_v34  ;;  %1644 = vmatprep.mubr.msk.bf16.mxu0 %vm1884_vm1, %v1883_v8 }
 0x456   : > { %1656 = vmatprep.subr.bf16.mxu0 %v1883_v8 }
 0x459   : > { %v1771_v35 = vpop.eup %1770 }
 0x45a   : > { %v1023_v36 = vsel %vm638_vm3, %v1771_v35, 0.0  ;;  %v1026_v37 = vpack.c.bf16 %v1771_v35, %v1771_v35 }
 0x45b   : > { %1024 = vadd.xlane.f32.xlu0 %v1023_v36 }
 0x45c   : > { %1645 = vmatmul.mubr.msk.bf16.vlgmr.msra.gmra.mrb[24].mxu0 %vm638_vm3, %v1026_v37 }
 0x45d   : > { %1660 = vmatprep.mubr.msk.bf16.mxu0 %vm1884_vm1, %v1883_v8  ;;  %1657 = vmatpush3.bf16.msra.mxu0 %v1752_v30 }
 0x45e   : > { %1658 = vmatprep.subr.bf16.mxu0 %v1883_v8 }
 0x45f   : > { %692 = vadd.xlane.f32.xlu0 %v691_v38  ;;  %v1517_v38 = vld [vmem:[%s2285_s6] ss:$0 sm:$0xff] }
 0x461   : > { %1659 = vmatpush3.bf16.msra.mxu0 %v1753_v31 }
 0x4ac   : > { %v736_v39 = vpop.f32.mrb[12].mxu0 }
 0x4ad   : > { %v1610_v40 = vpop.f32.mrb[13].mxu0 }
 0x4ae   : > { %v739_v41 = vpop.f32.mrb[14].mxu0  ;;  %v1518_v40 = vld [vmem:[%s2286_s7] ss:$0 sm:$0xff] }
 0x4af   : > { %v1611_v42 = vpop.f32.mrb[15].mxu0 }
 0x4d8   : > { %v804_v43 = vpop.xlane.xlu0 %803 }
 0x4d9   : > { %1772 = vrcp.f32 %v804_v43 }
 0x4e0   : > { %v915_v44 = vpop.xlane.xlu1 %914 }
 0x4e1   : > { %1774 = vrcp.f32 %v915_v44 }
 0x4e3   : > { %v1773_v46 = vpop.eup %1772 }
 0x4e8   : > { %v1025_v51 = vpop.xlane.xlu0 %1024 }
 0x4e9   : > { %1776 = vrcp.f32 %v1025_v51 }
 0x4eb   : > { %v1775_v54 = vpop.eup %1774 }
 0x4ec   : > { %v693_v3 = vpop.xlane.xlu0 %692 }
 0x4ed   : > { %1778 = vrcp.f32 %v693_v3 }
 0x4f3   : > { %v1777_v60 = vpop.eup %1776 }
 0x4f7   : > { %v1779_v4 = vpop.eup %1778 }
 0x4f8   : > { %v743_v6 = vmul.f32 %v1779_v4, %v736_v39 }
 0x51f   : > { %v849_v47 = vpop.f32.mrb[16].mxu0 }
 0x520   : > { %v856_v48 = vmul.f32 %v1773_v46, %v849_v47  ;;  %v1622_v49 = vpop.f32.mrb[17].mxu0  ;;  %v1758_v46 = vld [vmem:[%s2289_s10 + $0x20] sm:$0xff]   ;;  %v1759_v47 = vld [vmem:[%s2289_s10 + $0x28] sm:$0xff]  }
 0x521   : > { %v852_v50 = vpop.f32.mrb[18].mxu0  ;;  %v1761_v49 = vld [vmem:[%s2289_s10 + $0x38] sm:$0xff]  }
 0x522   : > { %1078 = vrot.lane.b32.xlu1 %v856_v48, %s1888_s16  ;;  %v1623_v52 = vpop.f32.mrb[19].mxu0  ;;  %v1760_v48 = vld [vmem:[%s2289_s10 + $0x30] sm:$0xff]   ;;  %v1519_v50 = vld [vmem:[%s2288_s9] ss:$0 sm:$0xff]  ;;  %s1533_s16 = sshll.u32 %s1978_s25, 7  ;;  %s1891_s25 = smov [#allocation8]  }
 0x523   : > { %s2236_s28 = scalar_lea.hbm %s2291_s12, %s1533_s16  ;;  %s1816_s30 = sshll.u32 %s1891_s25, 4  ;;  %s1817_s30 = int_to_ptr.vmem [resolvable:$false] %s1816_s30 }
 0x524   : > { %s1818_s18 = scalar_lea.vmem %s1817_s30, 256  ;;  %p1819_p2 = scmp.lt.s32.totalorder %s2238_s17, %s1817_s30 }
 0x525   : > { %p1820_p3 = scmp.lt.s32.totalorder %s1818_s18, %s1812_s26 }
 0x527   : > { %v959_v55 = vpop.f32.mrb[20].mxu0  ;;  %p1821_p4 = por %p1820_p3, %p1819_p2 }
 0x528   : > { %v966_v56 = vmul.f32 %v1775_v54, %v959_v55  ;;  %v1634_v57 = vpop.f32.mrb[21].mxu0 }
 0x529   : > { %v962_v58 = vpop.f32.mrb[22].mxu0  ;;  %p1822_p7 = pnand %p1821_p4, %p1815_p12 }
 0x52a   : > { %1082 = vrot.lane.b32.xlu0 %v966_v56, %s1889_s19  ;;  %v1635_v59 = vpop.f32.mrb[23].mxu0 }
 0x52f   : > { %v1069_v61 = vpop.f32.mrb[24].mxu0 }
 0x530   : > { %v1076_v62 = vmul.f32 %v1777_v60, %v1069_v61  ;;  %v1646_v63 = vpop.f32.mrb[25].mxu0 }
 0x531   : > { %v1072_v1 = vpop.f32.mrb[26].mxu0 }
 0x532   : > { %1086 = vrot.lane.b32.xlu1 %v1076_v62, %s1890_s20  ;;  %v1647_v2 = vpop.f32.mrb[27].mxu0 }
 0x594   : > { %v1079_v5 = vpop.permute.xlu1 %1078 }
 0x595   : > { %v1089_v9 = vsel %vm638_vm3, %v743_v6, %v1079_v5  ;;  %v1531_v6 = vld [vmem:[%s2290_s11] ss:$0 sm:$0xff] }
 0x59c   : > { %v1083_v7 = vpop.permute.xlu0 %1082 }
 0x59d   : > { %v1091_v10 = vsel %vm1090_vm5, %v1089_v9, %v1083_v7 }
 0x5a4   : > { %v1087_v11 = vpop.permute.xlu1 %1086 }
 0x5a5   : > { %v1093_v12 = vsel %vm1092_vm6, %v1091_v10, %v1087_v11 }
 0x5a6   : > { %v1095_v13 = vpack.c.bf16 %v1093_v12, %v1093_v12 }
 0x5a8   : > { %1653 = vmatmul.mubr.msk.bf16.vlgmr.msra.gmra.mrb[16].mxu1 %vm428_vm0, %v1095_v13 }
 0x5a9   : > { %1680 = vmatprep.mubr.msk.bf16.mxu1 %vm1884_vm1, %v1883_v8 }
 0x67b   : > { %v1149_v15 = vpop.f32.mrb[16].mxu1 }
 0x67c   : > { %v1155_v16 = vadd.f32 %v1149_v15, %v1094_v14  ;;  %v1654_v17 = vpop.f32.mrb[17].mxu1 }
 0x67d   : > { %v1152_v18 = vpop.f32.mrb[18].mxu1 }
 0x67e   : > { %1156 = vst.msk [vmem:[#allocation3] sm:$0xff] %vm428_vm0, %v1155_v16  ;;  %v1655_v19 = vpop.f32.mrb[19].mxu1 }
 0x685   : > { %v1158_v20 = vld [vmem:[#allocation3] sm:$0xff] }
 0x686   : > { %v1159_v22 = vadd.f32 %v1158_v20, %v2045_v0  ;;  %1200 = vst.msk [vmem:[#allocation3] sm:$0xff] %vm428_vm0, %v1883_v8  ;;  %v1754_v0 = vld [vmem:[%s2289_s10] sm:$0xff]  }
 0x687   : > { %1665 = vmatpush3.bf16.msra.mxu1 %v1754_v0 }
 0x688   : > { %v1167_v23 = vadd.f32 %v1516_v21, %v1159_v22  ;;  %1666 = vmatprep.subr.bf16.mxu1 %v1883_v8 }
 0x68a   : > { %v1171_v24 = vsel %vm428_vm0, %v1167_v23, 0.0  ;;  %1168 = vst.msk [vmem:[#allocation4] sm:$0xff] %vm428_vm0, %v1167_v23 }
 0x68b   : > { %1172 = vadd.xlane.f32.xlu1 %v1171_v24  ;;  %1667 = vmatpush3.bf16.msra.mxu1 %v1755_v32 }
 0x68c   : > { %1668 = vmatprep.subr.bf16.mxu1 %v1883_v8 }
 0x68d   : > { %v1273_v61 = vld [vmem:[#allocation3] sm:$0xff] }
 0x68f   : > { %1669 = vmatpush3.bf16.msra.mxu1 %v1756_v33 }
 0x690   : > { %1670 = vmatprep.subr.bf16.mxu1 %v1883_v8 }
 0x691   : > { %v1381_v4 = vld [vmem:[#allocation4] sm:$0xff] }
 0x693   : > { %1671 = vmatpush3.bf16.msra.mxu1 %v1757_v45 }
 0x694   : > { %1672 = vmatprep.subr.bf16.mxu1 %v1883_v8 }
 0x697   : > { %1673 = vmatpush3.bf16.msra.mxu1 %v1758_v46 }
 0x698   : > { %1674 = vmatprep.subr.bf16.mxu1 %v1883_v8 }
 0x69b   : > { %1675 = vmatpush3.bf16.msra.mxu1 %v1759_v47 }
 0x69c   : > { %1676 = vmatprep.subr.bf16.mxu1 %v1883_v8 }
 0x69f   : > { %1677 = vmatpush3.bf16.msra.mxu1 %v1760_v48 }
 0x6a0   : > { %1678 = vmatprep.subr.bf16.mxu1 %v1883_v8 }
 0x6a3   : > { %1679 = vmatpush3.bf16.msra.mxu1 %v1761_v49 }
 0x718   : > { %v1173_v25 = vpop.xlane.xlu1 %1172 }
 0x719   : > { %v1174_v26 = vmul.f32 0.03125, %v1173_v25 }
 0x71b   : > { %v1175_v27 = vsub.f32 %v1167_v23, %v1174_v26 }
 0x71d   : > { %v1176_v28 = vmul.f32 %v1175_v27, %v1175_v27 }
 0x71f   : > { %v1177_v29 = vsel %vm428_vm0, %v1176_v28, 0.0 }
 0x720   : > { %1178 = vadd.xlane.f32.xlu0 %v1177_v29 }
 0x7ad   : > { %v1179_v34 = vpop.xlane.xlu0 %1178 }
 0x7ae   : > { %v1180_v35 = vmul.f32 0.03125, %v1179_v34 }
 0x7b0   : > { %v1181_v36 = vadd.f32 1e-05, %v1180_v35 }
 0x7b2   : > { %1780 = vrsqrt.f32 %v1181_v36 }
 0x7bc   : > { %v1781_v37 = vpop.eup %1780 }
 0x7bd   : > { %v1183_v39 = vmul.f32 %v1781_v37, %v1175_v27 }
 0x7bf   : > { %v1190_v41 = vmul.f32 %v1517_v38, %v1183_v39 }
 0x7c1   : > { %v1197_v42 = vadd.f32 %v1518_v40, %v1190_v41 }
 0x7c3   : > { %v1198_v43 = vpack.c.bf16 %v1197_v42, %v1197_v42 }
 0x7c5   : > { %1199 = vst.msk [vmem:[#allocation2] sm:$0xf] %vm458_vm2, %v1198_v43 }
 0x7cc   : > { %v1201_v44 = vld [vmem:[#allocation2] sm:$0xf] }
 0x7cd   : > { %1661 = vmatmul.mubr.msk.bf16.vlgmr.msra.gmra.mrb[28].mxu0 %vm428_vm0, %v1201_v44 }
 0x8a0   : > { %v1262_v51 = vpop.f32.mrb[28].mxu0 }
 0x8a1   : > { %v1263_v52 = vadd.f32 %v1519_v50, %v1262_v51  ;;  %v1662_v53 = vpop.f32.mrb[29].mxu0 }
 0x8a2   : > { %v1265_v54 = vpop.f32.mrb[30].mxu0 }
 0x8a3   : > { %v1269_v55 = vmul.f32 0.70710677, %v1263_v52  ;;  %v1663_v56 = vpop.f32.mrb[31].mxu0  ;;  %v1268_v58 = vmul.f32 0.5, %v1263_v52 }
 0x8a5   : > { %1782 = verf.f32 %v1269_v55 }
 0x8af   : > { %v1783_v57 = vpop.eup %1782 }
 0x8b0   : > { %v1271_v8 = vadd.f32 1.0, %v1783_v57 }
 0x8b2   : > { %v1272_v59 = vmul.f32 %v1271_v8, %v1268_v58 }
 0x8b4   : > { %v1274_v60 = vpack.c.bf16 %v1272_v59, %v1272_v59 }
 0x8b6   : > { %1681 = vmatmul.mubr.bf16.vlgmr.msra.gmra.mrb[20].mxu1 %v1274_v60 }
 0x989   : > { %v1373_v62 = vpop.f32.mrb[20].mxu1 }
 0x98a   : > { %v1379_v63 = vadd.f32 %v1373_v62, %v1273_v61  ;;  %v1682_v1 = vpop.f32.mrb[21].mxu1 }
 0x98b   : > { %v1376_v2 = vpop.f32.mrb[22].mxu1 }
 0x98c   : > { %1380 = vst.msk [vmem:[#allocation3] sm:$0xff] %vm428_vm0, %v1379_v63  ;;  %v1683_v3 = vpop.f32.mrb[23].mxu1 }
 0x993   : > { %v1382_v5 = vld [vmem:[#allocation3] sm:$0xff] }
 0x994   : > { %v1383_v7 = vadd.f32 %v1382_v5, %v1381_v4 }
 0x996   : > { %v1391_v9 = vadd.f32 %v1531_v6, %v1383_v7 }
 0x998   : > { %1392 = vst.msk [vmem:[%s419_s15] sm:$0xff] %vm428_vm0, %v1391_v9 }
 0x999   : > { %1825 = shalt.err (!%p1822_p7)
}
 0x99a   : > { %s1826_s23 = scalar_lea.hbm %s2236_s28, 128  ;;  %s1830_s19 = scalar_lea.hbm %s2291_s12, 256 }
 0x99b   : > { %p1827_p8 = scmp.ne.s32.totalorder %s2236_s28, %s1826_s23  ;;  %p1831_p1 = scmp.lt.u32.totalorder %s2236_s28, %s2291_s12 }
 0x99c   : > { %p1832_p0 = scmp.lt.u32.totalorder %s1830_s19, %s1826_s23  ;;  %p1834_p6 = scmp.lt.u32.totalorder %s1826_s23, %s2236_s28 }
 0x99d   : > { %p1828_p11 = pnand %p1827_p8, %p2305_p9 }
 0x99e   : > { %p1833_p5 = por %p1832_p0, %p1831_p1 }
 0x99f   : > { %p1829_p13 = pneg %p1828_p11 }
 0x9a0   : > { %p1835_p10 = por %p1834_p6, %p1833_p5 }
 0x9a2   : > { %p1836_p12 = pnand %p1835_p10, %p1829_p13 }
 0x9a4   : > { %1839 = shalt.err (!%p1836_p12)
}
 0x9a5   : > { %1688 = dma.vmem_to_hbm [thread:$0]  (%p2305_p9), %s2238_s17, 128, %s2236_s28, %s1394_s29  }
 0x9a6 PF: > { %p1700_p2 = scmp.ge.s32.totalorder %s1878_s24, 2  ;;  %s1419_s26 = sand.u32 1, %s1866_s21  }
 0x9a7   : > { %p2306_p3 = scmp.ne.s32.totalorder %s2299_s14, 0  ;;  %s1420_s30 = scalar_lea.sflag [#allocation7], %s1419_s26 }
 0x9a9   : > { %p1695_p4 = pnand %p1700_p2, %p2306_p3 }
 0x9ab   : > { %1861 = dma.done.wait (!%p1695_p4), %s1420_s30, 128  }
 0x9ac   : > { %1863 = vsyncadd (!%p1695_p4), %s1420_s30, 4294967168  ;;  %s2307_s18 = sld [smem:[#allocation11_spill]]  ;;  %s2308_s23 = sld [smem:[#allocation12_spill]] }
 0x9ad   : > { %p23_p7 = scmp.ge.s32.totalorder %s1982_s27, 4   ;;  %s2309_s21 = smov %s1870_s22 }
 0x9ae   : > { %s2311_s24 = smov %s1982_s27 }
 0x9af   :  { %25 = sbr.rel (!%p23_p7) target bundleno = 4 (0x4), region = 110 }
 0x9b2   : > { %s2310_s22 = smov %s2307_s18 }
 0x9b6   :  { %1425 = vsyncpa [#allocation6], 1 }
 0x9b7   :  { %1427 = vsyncpa [#allocation6 + $0x1], 1 }
 0x9b8   :  { %1428 = vsyncpa [#allocation7], 1 }
 0x9b9   :  { %1430 = vsyncpa [#allocation7 + $0x1], 1 }

// kernel: tpu_custom_call.1
= control target key start
LH: loop header
LB: loop body
LE: loop exit
PB: predicated region body
PF: predicated region fallthrough
CT: control target
= control target key end

     0   :  { %17 = vsyncpa [#allocation6], 0  ;;  %s2279_s0 = inlined_call_operand.vmem [shape: f32[2,8,32], index: 0, kind: input, shape index: {}]   ;;  %s2280_s1 = inlined_call_operand.vmem [shape: f32[1,32], index: 1, kind: input, shape index: {}]   ;;  %s2281_s2 = inlined_call_operand.vmem [shape: f32[1,32], index: 2, kind: input, shape index: {}]   ;;  %s2282_s3 = inlined_call_operand.vmem [shape: bf16[3,32,32], index: 3, kind: input, shape index: {}]   ;;  %s2283_s4 = inlined_call_operand.vmem [shape: bf16[1,32,32], index: 4, kind: input, shape index: {}]   ;;  %s2284_s5 = inlined_call_operand.vmem [shape: f32[1,32], index: 5, kind: input, shape index: {}]   ;;  %s2285_s6 = inlined_call_operand.vmem [shape: f32[1,32], index: 6, kind: input, shape index: {}]   ;;  %s2286_s7 = inlined_call_operand.vmem [shape: f32[1,32], index: 7, kind: input, shape index: {}]   ;;  %s2287_s8 = inlined_call_operand.hbm [shape: bf16[1,32,128], index: 8, kind: input, shape index: {}]   ;;  %s2288_s9 = inlined_call_operand.vmem [shape: f32[1,1,128], index: 9, kind: input, shape index: {}]   ;;  %s2289_s10 = inlined_call_operand.vmem [shape: bf16[1,128,32], index: 10, kind: input, shape index: {}]   ;;  %s2290_s11 = inlined_call_operand.vmem [shape: f32[1,32], index: 11, kind: input, shape index: {}]   ;;  %s2291_s12 = inlined_call_operand.hbm [shape: f32[2,8,32], index: 12, kind: output, shape index: {}]  }
   0x1   :  { %18 = vsyncpa [#allocation7], 0 }
   0x2   :  { %20 = vsyncpa [#allocation7 + $0x1], 0  ;;  %s1957_s21 = smov 0   ;;  %s1959_s22 = smov 0  }
   0x3   :  { %s1961_s23 = smov 0   ;;  %s1963_s24 = smov 0  }
   0x4 LB: > { %2296 = sst [smem:[#allocation11_spill]] %s1874_s23  ;;  %s1978_s25 = sadd.s32 4294967295, %s1878_s24   ;;  %s1878_s24 = sphi %s1963_s24, %s2311_s24   ;;  %s1874_s23 = sphi %s1961_s23, %s2308_s23   ;;  %s1870_s22 = sphi %s1959_s22, %s2310_s22   ;;  %s1866_s21 = sphi %s1957_s21, %s2309_s21  }
   0x5   : > { %s1478_s26 = sadd.s32 4294967294, %s1878_s24   ;;  %s1982_s27 = sadd.s32 1, %s1878_s24  }
   0x6   : > { %s290_s28 = sadd.s32 1, %s1874_s23  ;;  %s287_s29 = ssub.s32 %s1878_s24, %s1982_s27 }
   0x7   : > { %p300_p0 = scmp.ne.s32.totalorder %s1874_s23, %s1870_s22  ;;  %p288_p1 = scmp.eq.s32.totalorder %s287_s29, 0 }
   0x8   : > { %p301_p2 = scmp.eq.s32.totalorder %s1978_s25, 1  ;;  %p306_p3 = scmp.ne.s32.totalorder %s1870_s22, %s1866_s21 }
   0x9   : > { %p307_p4 = scmp.eq.s32.totalorder %s1478_s26, 1  ;;  %p1479_p7 = scmp.ge.s32.totalorder %s1878_s24, 1 }
   0xa   : > { %s1993_s30 = scalar_select %p288_p1, %s1874_s23, %s290_s28  }
   0xb   : > { %p1995_p5 = por %p301_p2, %p300_p0  ;;  %p1999_p6 = por %p307_p4, %p306_p3 }
   0xc   : > { %2297 = sst [smem:[#allocation12_spill]] %s1993_s30  ;;  %p314_p8 = scmp.lt.s32.totalorder %s1878_s24, 3 }
   0xd   : > { %s2298_s13 = scalar_select %p1995_p5, 1, 0 }
   0xe   : > { %s2299_s14 = scalar_select %p1999_p6, 1, 0 }
   0xf   : > { %p2293_p9 = scmp.eq.s32.totalorder %s1978_s25, 0  ;;  %p2006_p10 = pnand %p1479_p7, %p314_p8 }
  0x10   : > { %s1880_s16 = smov [#allocation5]   ;;  %s1784_s26 = scalar_lea.hbm %s2287_s8, 256 }
  0x11   : > { %s2300_s15 = scalar_select %p2006_p10, 1, 0 }
  0x12   : > { %s347_s17 = sshll.u32 %s1880_s16, 4  ;;  %p1690_p11 = pneg %p2006_p10  ;;  %s348_s17 = int_to_ptr.vmem [resolvable:$true] %s347_s17 }
  0x13   : > { %p1785_p13 = scmp.ne.s32.totalorder %s2287_s8, %s1784_s26  ;;  %p1791_p3 = scmp.lt.u32.totalorder %s1784_s26, %s2287_s8 }
  0x14   : > { %p2014_p12 = pnand %p2293_p9, %p1690_p11 }
  0x16   : > { %p1786_p0 = pneg %p2014_p12 }
  0x18   : > { %p1787_p1 = pnand %p1786_p0, %p1785_p13 }
  0x1a   : > { %p1788_p2 = pneg %p1787_p1 }
  0x1c   : > { %p1793_p4 = pnand %p1791_p3, %p1788_p2 }
  0x1e   : > { %1796 = shalt.err (!%p1793_p4)
}
  0x1f   : > { %s1797_s23 = scalar_lea.vmem %s348_s17, 256  ;;  %p1805_p9 = scmp.lt.s32.totalorder %s348_s17, %s348_s17 }
  0x20   : > { %p1798_p7 = scmp.ne.s32.totalorder %s348_s17, %s1797_s23  ;;  %p1806_p6 = scmp.lt.s32.totalorder %s1797_s23, %s1797_s23 }
  0x22   : > { %p1800_p8 = pnand %p1798_p7, %p1786_p0  ;;  %p1807_p5 = por %p1806_p6, %p1805_p9 }
  0x24   : > { %p1801_p11 = pneg %p1800_p8 }
  0x26   : > { %p1808_p10 = pnand %p1807_p5, %p1801_p11 }
  0x28   : > { %1811 = shalt.err (!%p1808_p10)
}
  0x29   : > { %s1881_s19 = smov 64   ;;  %s1882_s20 = smov 4  }
  0x2a   : > { %1693 = dma.hbm_to_vmem [thread:$0]  (!%p2014_p12), %s2287_s8, 256, %s348_s17, [#allocation6], %s1881_s19, %s1881_s19, %s1882_s20  }
  0x2b   : > { %p2302_p13 = scmp.ne.s32.totalorder %s2300_s15, 0 }
  0x2c   : > { %p2303_p1 = scmp.eq.s32.totalorder (!%p2302_p13), %s1978_s25, 0 }
  0x2d   : > { %379 = sbr.rel (%p2302_p13) target bundleno = 2470 (0x9a6), region = 68 }
  0x34   : > { %1857 = dma.done.wait (%p2303_p1), [#allocation6], 256   ;;  %p2304_p0 = pmov %p2303_p1 }
  0x35   : > { %p420_p5 = scmp.lt.s32.totalorder %s1978_s25, 1  ;;  %vm428_vm0 = vcmask 261120   ;;  %v1744_v7 = vld [vmem:[%s2282_s3] sm:$0xff]   ;;  %v1883_v8 = vmov 0.0   ;;  %v1745_v9 = vld [vmem:[%s2282_s3 + $0x8] sm:$0xff]   ;;  %vm1884_vm1 = vmmov 0  }
  0x36   : > { %1859 = vsyncadd (%p2304_p0), [#allocation6], 4294967040  ;;  %1576 = vmatprep.subr.bf16.mxu0 %v1883_v8  ;;  %460 = vst.msk [vmem:[#allocation3] sm:$0xff] %vm428_vm0, %v1883_v8  ;;  %1600 = vmatprep.subr.bf16.mxu1 %v1883_v8  ;;  %v1486_v14 = vld [vmem:[%s2280_s1] ss:$0 sm:$0xff]  ;;  %vm458_vm2 = vcmask 257024  }
  0x37   : > { %s421_s23 = scalar_select %p420_p5, %s1978_s25, 1  ;;  %1577 = vmatpush3.bf16.msra.mxu0 %v1744_v7  ;;  %1580 = vmatprep.mubr.msk.bf16.mxu0 %vm1884_vm1, %v1883_v8  ;;  %v1487_v16 = vld [vmem:[%s2281_s2] ss:$0 sm:$0xff]  ;;  %v1746_v20 = vld [vmem:[%s2282_s3 + $0x10] sm:$0xff]   ;;  %v1747_v22 = vld [vmem:[%s2282_s3 + $0x18] sm:$0xff]   ;;  %vm638_vm3 = vcmask 64512  }
  0x38   : > { %1578 = vmatprep.subr.bf16.mxu0 %v1883_v8  ;;  %1602 = vmatprep.mubr.msk.bf16.mxu1 %vm1884_vm1, %v1883_v8  ;;  %v1748_v23 = vld [vmem:[%s2282_s3 + $0x20] sm:$0xff]   ;;  %v1749_v24 = vld [vmem:[%s2282_s3 + $0x28] sm:$0xff]   ;;  %s1885_s29 = smov 112   ;;  %vm698_vm4 = vcmask 1043456   ;;  %s1889_s19 = smov 16   ;;  %vm1090_vm5 = vcmask 130048  }
  0x39   : > { %s1485_s30 = sshll.u32 %s421_s23, 3  ;;  %s1886_s23 = smov 120   ;;  %vm1092_vm6 = vcmask 195584  }
  0x3a   : > { %s423_s16 = scalar_lea.vmem %s2279_s0, %s1485_s30  ;;  %s1887_s30 = smov 104  }
  0x3b   : > { %v2045_v0 = vld [vmem:[%s423_s16] sm:$0xff]  ;;  %1579 = vmatpush3.bf16.msra.mxu0 %v1745_v9  ;;  %s1888_s16 = smov 8   ;;  %s1890_s20 = smov 24  }
  0x3c   : > { %v429_v1 = vsel %vm428_vm0, %v2045_v0, 0.0  ;;  %1584 = vmatprep.subr.bf16.mxu0 %v1883_v8  ;;  %p2305_p9 = scmp.ne.s32.totalorder %s2298_s13, 0 }
  0x3d   : > { %430 = vadd.xlane.f32.xlu0 %v429_v1 }
  0xca   : > { %v431_v2 = vpop.xlane.xlu0 %430 }
  0xcb   : > { %v433_v3 = vmul.f32 0.03125, %v431_v2 }
  0xcd   : > { %v434_v4 = vsub.f32 %v2045_v0, %v433_v3 }
  0xcf   : > { %v435_v5 = vmul.f32 %v434_v4, %v434_v4 }
  0xd1   : > { %v436_v6 = vsel %vm428_vm0, %v435_v5, 0.0 }
  0xd2   : > { %437 = vadd.xlane.f32.xlu0 %v436_v6 }
 0x15f   : > { %v438_v10 = vpop.xlane.xlu0 %437 }
 0x160   : > { %v439_v11 = vmul.f32 0.03125, %v438_v10 }
 0x162   : > { %v440_v12 = vadd.f32 1e-05, %v439_v11 }
 0x164   : > { %1762 = vrsqrt.f32 %v440_v12 }
 0x16e   : > { %v1763_v13 = vpop.eup %1762 }
 0x16f   : > { %v442_v15 = vmul.f32 %v1763_v13, %v434_v4 }
 0x171   : > { %v449_v17 = vmul.f32 %v1486_v14, %v442_v15 }
 0x173   : > { %v456_v18 = vadd.f32 %v1487_v16, %v449_v17 }
 0x175   : > { %v457_v19 = vpack.c.bf16 %v456_v18, %v456_v18 }
 0x177   : > { %459 = vst.msk [vmem:[#allocation2] sm:$0xf] %vm458_vm2, %v457_v19 }
 0x17e   : > { %v461_v21 = vld [vmem:[#allocation2] sm:$0xf] }
 0x17f   : > { %1581 = vmatmul.mubr.msk.bf16.vlgmr.msra.gmra.mrb[0].mxu0 %vm428_vm0, %v461_v21 }
 0x180   : > { %1585 = vmatpush3.bf16.msra.mxu0 %v1746_v20  ;;  %1588 = vmatprep.mubr.msk.bf16.mxu0 %vm1884_vm1, %v1883_v8 }
 0x181   : > { %1586 = vmatprep.subr.bf16.mxu0 %v1883_v8 }
 0x184   : > { %1587 = vmatpush3.bf16.msra.mxu0 %v1747_v22 }
 0x185   : > { %1592 = vmatprep.subr.bf16.mxu0 %v1883_v8 }
 0x187   : > { %1589 = vmatmul.mubr.msk.bf16.vlgmr.msra.gmra.mrb[4].mxu0 %vm428_vm0, %v461_v21 }
 0x188   : > { %1593 = vmatpush3.bf16.msra.mxu0 %v1748_v23  ;;  %1596 = vmatprep.mubr.msk.bf16.mxu0 %vm1884_vm1, %v1883_v8 }
 0x189   : > { %1594 = vmatprep.subr.bf16.mxu0 %v1883_v8 }
 0x18c   : > { %1595 = vmatpush3.bf16.msra.mxu0 %v1749_v24 }
 0x18d   : > { %1606 = vmatprep.subr.bf16.mxu0 %v1883_v8 }
 0x18f   : > { %1597 = vmatmul.mubr.msk.bf16.vlgmr.msra.gmra.mrb[8].mxu0 %vm428_vm0, %v461_v21 }
 0x190   : > { %1608 = vmatprep.mubr.msk.bf16.mxu0 %vm1884_vm1, %v1883_v8 }
 0x252   : > { %v515_v25 = vpop.f32.mrb[0].mxu0 }
 0x253   : > { %v1582_v26 = vpop.f32.mrb[1].mxu0  ;;  %v521_v35 = vpack.c.bf16 %v515_v25, %v515_v25 }
 0x254   : > { %v518_v27 = vpop.f32.mrb[2].mxu0 }
 0x255   : > { %v1583_v28 = vpop.f32.mrb[3].mxu0 }
 0x25a   : > { %v573_v29 = vpop.f32.mrb[4].mxu0 }
 0x25b   : > { %v579_v30 = vpack.c.bf16 %v573_v29, %v573_v29  ;;  %v1590_v31 = vpop.f32.mrb[5].mxu0 }
 0x25c   : > { %v576_v32 = vpop.f32.mrb[6].mxu0 }
 0x25d   : > { %859 = vrot.lane.b32.xlu0 %v579_v30, %s1885_s29  ;;  %748 = vrot.lane.b32.xlu1 %v579_v30, %s1886_s23  ;;  %v1591_v33 = vpop.f32.mrb[7].mxu0  ;;  %v643_v34 = vsel %vm638_vm3, %v579_v30, 0 }
 0x25e   : > { %1601 = vmatpush3.bf16.xpose.msra.mxu1 %v643_v34 }
 0x25f   : > { %1612 = vmatprep.subr.bf16.mxu1 %v1883_v8 }
 0x261   : > { %745 = vrot.lane.b32.xlu1 %v521_v35, %s1886_s23 }
 0x262   : > { %v631_v36 = vpop.f32.mrb[8].mxu0 }
 0x263   : > { %v2104_v37 = vpack.c.bf16 %v631_v36, %v631_v36  ;;  %v1598_v38 = vpop.f32.mrb[9].mxu0 }
 0x264   : > { %v634_v39 = vpop.f32.mrb[10].mxu0 }
 0x265   : > { %857 = vrot.lane.b32.xlu1 %v521_v35, %s1885_s29  ;;  %v1599_v40 = vpop.f32.mrb[11].mxu0  ;;  %1603 = vmatmul.mubr.msk.bf16.vlgmr.msra.gmra.mrb[0].mxu1 %vm638_vm3, %v521_v35  ;;  %v700_v41 = vsel %vm698_vm4, %v2104_v37, 0 }
 0x266   : > { %1607 = vmatpush3.bf16.msra.mxu0 %v700_v41  ;;  %1614 = vmatprep.mubr.msk.bf16.mxu1 %vm1884_vm1, %v1883_v8 }
 0x267   : > { %1618 = vmatprep.subr.bf16.mxu0 %v1883_v8 }
 0x269   : > { %969 = vrot.lane.b32.xlu1 %v579_v30, %s1887_s30 }
 0x26d   : > { %967 = vrot.lane.b32.xlu1 %v521_v35, %s1887_s30 }
 0x2cf   : > { %v749_v42 = vpop.permute.xlu1 %748  ;;  %v860_v45 = vpop.permute.xlu0 %859 }
 0x2d0   : > { %v754_v43 = vsel %vm638_vm3, %v749_v42, 0  ;;  %v865_v47 = vsel %vm638_vm3, %v860_v45, 0  ;;  %v1750_v45 = vld [vmem:[%s2283_s4] sm:$0xff]  }
 0x2d1   : > { %1613 = vmatpush3.bf16.xpose.msra.mxu1 %v754_v43 }
 0x2d2   : > { %1624 = vmatprep.subr.bf16.mxu1 %v1883_v8 }
 0x2d3   : > { %v746_v44 = vpop.permute.xlu1 %745 }
 0x2d7   : > { %v858_v46 = vpop.permute.xlu1 %857 }
 0x2d8   : > { %1615 = vmatmul.mubr.msk.bf16.vlgmr.msra.gmra.mrb[4].mxu1 %vm638_vm3, %v746_v44 }
 0x2d9   : > { %1625 = vmatpush3.bf16.xpose.msra.mxu1 %v865_v47  ;;  %1626 = vmatprep.mubr.msk.bf16.mxu1 %vm1884_vm1, %v1883_v8 }
 0x2da   : > { %1636 = vmatprep.subr.bf16.mxu1 %v1883_v8 }
 0x2db   : > { %v970_v48 = vpop.permute.xlu1 %969 }
 0x2dc   : > { %v975_v49 = vsel %vm638_vm3, %v970_v48, 0 }
 0x2df   : > { %v968_v50 = vpop.permute.xlu1 %967 }
 0x2e0   : > { %1627 = vmatmul.mubr.msk.bf16.vlgmr.msra.gmra.mrb[8].mxu1 %vm638_vm3, %v858_v46 }
 0x2e1   : > { %1637 = vmatpush3.bf16.xpose.msra.mxu1 %v975_v49  ;;  %1638 = vmatprep.mubr.msk.bf16.mxu1 %vm1884_vm1, %v1883_v8 }
 0x2e2   : > { %1648 = vmatprep.subr.bf16.mxu1 %v1883_v8 }
 0x2e8   : > { %1639 = vmatmul.mubr.msk.bf16.vlgmr.msra.gmra.mrb[12].mxu1 %vm638_vm3, %v968_v50 }
 0x2e9   : > { %1652 = vmatprep.mubr.msk.bf16.mxu1 %vm1884_vm1, %v1883_v8  ;;  %1649 = vmatpush3.bf16.msra.mxu1 %v1750_v45  ;;  %v1757_v45 = vld [vmem:[%s2289_s10 + $0x18] sm:$0xff]  }
 0x2ea   : > { %1650 = vmatprep.subr.bf16.mxu1 %v1883_v8 }
 0x338   : > { %v679_v51 = vpop.f32.mrb[0].mxu1 }
 0x339   : > { %v1604_v52 = vpop.f32.mrb[1].mxu1  ;;  %v685_v53 = vsel %vm638_vm3, %v679_v51, -inf }
 0x33a   : > { %686 = vmax.xlane.f32.xlu1 %v685_v53  ;;  %v682_v54 = vpop.f32.mrb[2].mxu1  ;;  %v1751_v53 = vld [vmem:[%s2283_s4 + $0x8] sm:$0xff]  }
 0x33b   : > { %v1605_v55 = vpop.f32.mrb[3].mxu1  ;;  %1651 = vmatpush3.bf16.msra.mxu1 %v1751_v53 }
 0x33c   : > { %1664 = vmatprep.subr.bf16.mxu1 %v1883_v8 }
 0x34b   : > { %917 = vrot.lane.b32.xlu1 %v2104_v37, %s1885_s29 }
 0x3ab   : > { %v790_v56 = vpop.f32.mrb[4].mxu1 }
 0x3ac   : > { %v1616_v57 = vpop.f32.mrb[5].mxu1  ;;  %v796_v58 = vsel %vm638_vm3, %v790_v56, -inf }
 0x3ad   : > { %797 = vmax.xlane.f32.xlu0 %v796_v58  ;;  %v793_v59 = vpop.f32.mrb[6].mxu1 }
 0x3ae   : > { %v1617_v60 = vpop.f32.mrb[7].mxu1 }
 0x3b3   : > { %v901_v61 = vpop.f32.mrb[8].mxu1 }
 0x3b4   : > { %v1628_v62 = vpop.f32.mrb[9].mxu1  ;;  %v907_v63 = vsel %vm638_vm3, %v901_v61, -inf }
 0x3b5   : > { %v904_v1 = vpop.f32.mrb[10].mxu1  ;;  %908 = vmax.xlane.f32.xlu1 %v907_v63 }
 0x3b6   : > { %v1629_v2 = vpop.f32.mrb[11].mxu1 }
 0x3bb   : > { %v1011_v3 = vpop.f32.mrb[12].mxu1 }
 0x3bc   : > { %v1640_v4 = vpop.f32.mrb[13].mxu1  ;;  %v1017_v5 = vsel %vm638_vm3, %v1011_v3, -inf }
 0x3bd   : > { %v1014_v6 = vpop.f32.mrb[14].mxu1  ;;  %1018 = vmax.xlane.f32.xlu1 %v1017_v5 }
 0x3be   : > { %v1641_v7 = vpop.f32.mrb[15].mxu1 }
 0x3c3   : > { %807 = vrot.lane.b32.xlu0 %v2104_v37, %s1886_s23  ;;  %s417_s23 = sand.u32 1, %s1870_s22  }
 0x3c4   : > { %s1394_s29 = scalar_lea.sflag [#allocation7], %s417_s23 }
 0x3c7   : > { %v687_v9 = vpop.xlane.xlu1 %686 }
 0x3c8   : > { %v688_v10 = vsub.f32 %v679_v51, %v687_v9 }
 0x3ca   : > { %v689_v11 = vmul.f32 1.442695, %v688_v10 }
 0x3cb   : > { %v918_v17 = vpop.permute.xlu1 %917 }
 0x3cc   : > { %1764 = vpow2.f32 %v689_v11  ;;  %v923_v28 = vsel %vm698_vm4, %v918_v17, 0 }
 0x3ce   : > { %1027 = vrot.lane.b32.xlu1 %v2104_v37, %s1887_s30  ;;  %s1484_s30 = sshll.u32 %s417_s23, 3 }
 0x3cf   : > { %s419_s15 = scalar_lea.vmem [#allocation8], %s1484_s30 }
 0x3d0   : > { %s1407_s17 = sshll.u32 %s419_s15, 4  ;;  %s2238_s17 = int_to_ptr.vmem [resolvable:$true] %s1407_s17 }
 0x3d1   : > { %s1812_s26 = scalar_lea.vmem %s2238_s17, 128 }
 0x3d2   : > { %p1813_p6 = scmp.ne.s32.totalorder %s2238_s17, %s1812_s26 }
 0x3d4   : > { %p1814_p10 = pnand %p1813_p6, %p2305_p9 }
 0x3d6   : > { %v1765_v12 = vpop.eup %1764  ;;  %p1815_p12 = pneg %p1814_p10 }
 0x3d7   : > { %v694_v13 = vpack.c.bf16 %v1765_v12, %v1765_v12  ;;  %v691_v38 = vsel %vm638_vm3, %v1765_v12, 0.0 }
 0x3d9   : > { %1609 = vmatmul.mubr.msk.bf16.vlgmr.msra.gmra.mrb[12].mxu0 %vm638_vm3, %v694_v13 }
 0x3da   : > { %1620 = vmatprep.mubr.msk.bf16.mxu0 %vm1884_vm1, %v1883_v8 }
 0x43a   : > { %v798_v14 = vpop.xlane.xlu0 %797 }
 0x43b   : > { %v799_v15 = vsub.f32 %v790_v56, %v798_v14  ;;  %v1094_v14 = vld [vmem:[#allocation3] sm:$0xff] }
 0x43d   : > { %v800_v16 = vmul.f32 1.442695, %v799_v15 }
 0x43e   : > { %v808_v18 = vpop.permute.xlu0 %807 }
 0x43f   : > { %1766 = vpow2.f32 %v800_v16  ;;  %v813_v19 = vsel %vm698_vm4, %v808_v18, 0 }
 0x440   : > { %1619 = vmatpush3.bf16.msra.mxu0 %v813_v19 }
 0x441   : > { %1630 = vmatprep.subr.bf16.mxu0 %v1883_v8 }
 0x442   : > { %v909_v20 = vpop.xlane.xlu1 %908 }
 0x443   : > { %v910_v21 = vsub.f32 %v901_v61, %v909_v20 }
 0x445   : > { %v911_v22 = vmul.f32 1.442695, %v910_v21  ;;  %v1516_v21 = vld [vmem:[%s2284_s5] ss:$0 sm:$0xff] }
 0x447   : > { %1768 = vpow2.f32 %v911_v22 }
 0x449   : > { %v1767_v23 = vpop.eup %1766 }
 0x44a   : > { %v1019_v24 = vpop.xlane.xlu1 %1018  ;;  %v802_v25 = vsel %vm638_vm3, %v1767_v23, 0.0  ;;  %v805_v26 = vpack.c.bf16 %v1767_v23, %v1767_v23 }
 0x44b   : > { %v1020_v27 = vsub.f32 %v1011_v3, %v1019_v24  ;;  %803 = vadd.xlane.f32.xlu0 %v802_v25 }
 0x44c   : > { %1621 = vmatmul.mubr.msk.bf16.vlgmr.msra.gmra.mrb[16].mxu0 %vm638_vm3, %v805_v26 }
 0x44d   : > { %v1021_v29 = vmul.f32 1.442695, %v1020_v27  ;;  %1631 = vmatpush3.bf16.msra.mxu0 %v923_v28  ;;  %1632 = vmatprep.mubr.msk.bf16.mxu0 %vm1884_vm1, %v1883_v8 }
 0x44e   : > { %1642 = vmatprep.subr.bf16.mxu0 %v1883_v8  ;;  %v1028_v31 = vpop.permute.xlu1 %1027 }
 0x44f   : > { %1770 = vpow2.f32 %v1021_v29  ;;  %v1033_v34 = vsel %vm698_vm4, %v1028_v31, 0  ;;  %v1753_v31 = vld [vmem:[#allocation5 + $0x8] sm:$0xff]  }
 0x451   : > { %v1769_v30 = vpop.eup %1768 }
 0x452   : > { %v913_v32 = vsel %vm638_vm3, %v1769_v30, 0.0  ;;  %v916_v33 = vpack.c.bf16 %v1769_v30, %v1769_v30  ;;  %v1752_v30 = vld [vmem:[#allocation5] sm:$0xff]  }
 0x453   : > { %914 = vadd.xlane.f32.xlu1 %v913_v32  ;;  %v1755_v32 = vld [vmem:[%s2289_s10 + $0x8] sm:$0xff]  }
 0x454   : > { %1633 = vmatmul.mubr.msk.bf16.vlgmr.msra.gmra.mrb[20].mxu0 %vm638_vm3, %v916_v33  ;;  %v1756_v33 = vld [vmem:[%s2289_s10 + $0x10] sm:$0xff]  }
 0x455   : > { %1643 = vmatpush3.bf16.msra.mxu0 %v1033_v34  ;;  %1644 = vmatprep.mubr.msk.bf16.mxu0 %vm1884_vm1, %v1883_v8 }
 0x456   : > { %1656 = vmatprep.subr.bf16.mxu0 %v1883_v8 }
 0x459   : > { %v1771_v35 = vpop.eup %1770 }
 0x45a   : > { %v1023_v36 = vsel %vm638_vm3, %v1771_v35, 0.0  ;;  %v1026_v37 = vpack.c.bf16 %v1771_v35, %v1771_v35 }
 0x45b   : > { %1024 = vadd.xlane.f32.xlu0 %v1023_v36 }
 0x45c   : > { %1645 = vmatmul.mubr.msk.bf16.vlgmr.msra.gmra.mrb[24].mxu0 %vm638_vm3, %v1026_v37 }
 0x45d   : > { %1660 = vmatprep.mubr.msk.bf16.mxu0 %vm1884_vm1, %v1883_v8  ;;  %1657 = vmatpush3.bf16.msra.mxu0 %v1752_v30 }
 0x45e   : > { %1658 = vmatprep.subr.bf16.mxu0 %v1883_v8 }
 0x45f   : > { %692 = vadd.xlane.f32.xlu0 %v691_v38  ;;  %v1517_v38 = vld [vmem:[%s2285_s6] ss:$0 sm:$0xff] }
 0x461   : > { %1659 = vmatpush3.bf16.msra.mxu0 %v1753_v31 }
 0x4ac   : > { %v736_v39 = vpop.f32.mrb[12].mxu0 }
 0x4ad   : > { %v1610_v40 = vpop.f32.mrb[13].mxu0 }
 0x4ae   : > { %v739_v41 = vpop.f32.mrb[14].mxu0  ;;  %v1518_v40 = vld [vmem:[%s2286_s7] ss:$0 sm:$0xff] }
 0x4af   : > { %v1611_v42 = vpop.f32.mrb[15].mxu0 }
 0x4d8   : > { %v804_v43 = vpop.xlane.xlu0 %803 }
 0x4d9   : > { %1772 = vrcp.f32 %v804_v43 }
 0x4e0   : > { %v915_v44 = vpop.xlane.xlu1 %914 }
 0x4e1   : > { %1774 = vrcp.f32 %v915_v44 }
 0x4e3   : > { %v1773_v46 = vpop.eup %1772 }
 0x4e8   : > { %v1025_v51 = vpop.xlane.xlu0 %1024 }
 0x4e9   : > { %1776 = vrcp.f32 %v1025_v51 }
 0x4eb   : > { %v1775_v54 = vpop.eup %1774 }
 0x4ec   : > { %v693_v3 = vpop.xlane.xlu0 %692 }
 0x4ed   : > { %1778 = vrcp.f32 %v693_v3 }
 0x4f3   : > { %v1777_v60 = vpop.eup %1776 }
 0x4f7   : > { %v1779_v4 = vpop.eup %1778 }
 0x4f8   : > { %v743_v6 = vmul.f32 %v1779_v4, %v736_v39 }
 0x51f   : > { %v849_v47 = vpop.f32.mrb[16].mxu0 }
 0x520   : > { %v856_v48 = vmul.f32 %v1773_v46, %v849_v47  ;;  %v1622_v49 = vpop.f32.mrb[17].mxu0  ;;  %v1758_v46 = vld [vmem:[%s2289_s10 + $0x20] sm:$0xff]   ;;  %v1759_v47 = vld [vmem:[%s2289_s10 + $0x28] sm:$0xff]  }
 0x521   : > { %v852_v50 = vpop.f32.mrb[18].mxu0  ;;  %v1761_v49 = vld [vmem:[%s2289_s10 + $0x38] sm:$0xff]  }
 0x522   : > { %1078 = vrot.lane.b32.xlu1 %v856_v48, %s1888_s16  ;;  %v1623_v52 = vpop.f32.mrb[19].mxu0  ;;  %v1760_v48 = vld [vmem:[%s2289_s10 + $0x30] sm:$0xff]   ;;  %v1519_v50 = vld [vmem:[%s2288_s9] ss:$0 sm:$0xff]  ;;  %s1533_s16 = sshll.u32 %s1978_s25, 7  ;;  %s1891_s25 = smov [#allocation8]  }
 0x523   : > { %s2236_s28 = scalar_lea.hbm %s2291_s12, %s1533_s16  ;;  %s1816_s30 = sshll.u32 %s1891_s25, 4  ;;  %s1817_s30 = int_to_ptr.vmem [resolvable:$false] %s1816_s30 }
 0x524   : > { %s1818_s18 = scalar_lea.vmem %s1817_s30, 256  ;;  %p1819_p2 = scmp.lt.s32.totalorder %s2238_s17, %s1817_s30 }
 0x525   : > { %p1820_p3 = scmp.lt.s32.totalorder %s1818_s18, %s1812_s26 }
 0x527   : > { %v959_v55 = vpop.f32.mrb[20].mxu0  ;;  %p1821_p4 = por %p1820_p3, %p1819_p2 }
 0x528   : > { %v966_v56 = vmul.f32 %v1775_v54, %v959_v55  ;;  %v1634_v57 = vpop.f32.mrb[21].mxu0 }
 0x529   : > { %v962_v58 = vpop.f32.mrb[22].mxu0  ;;  %p1822_p7 = pnand %p1821_p4, %p1815_p12 }
 0x52a   : > { %1082 = vrot.lane.b32.xlu0 %v966_v56, %s1889_s19  ;;  %v1635_v59 = vpop.f32.mrb[23].mxu0 }
 0x52f   : > { %v1069_v61 = vpop.f32.mrb[24].mxu0 }
 0x530   : > { %v1076_v62 = vmul.f32 %v1777_v60, %v1069_v61  ;;  %v1646_v63 = vpop.f32.mrb[25].mxu0 }
 0x531   : > { %v1072_v1 = vpop.f32.mrb[26].mxu0 }
 0x532   : > { %1086 = vrot.lane.b32.xlu1 %v1076_v62, %s1890_s20  ;;  %v1647_v2 = vpop.f32.mrb[27].mxu0 }
 0x594   : > { %v1079_v5 = vpop.permute.xlu1 %1078 }
 0x595   : > { %v1089_v9 = vsel %vm638_vm3, %v743_v6, %v1079_v5  ;;  %v1531_v6 = vld [vmem:[%s2290_s11] ss:$0 sm:$0xff] }
 0x59c   : > { %v1083_v7 = vpop.permute.xlu0 %1082 }
 0x59d   : > { %v1091_v10 = vsel %vm1090_vm5, %v1089_v9, %v1083_v7 }
 0x5a4   : > { %v1087_v11 = vpop.permute.xlu1 %1086 }
 0x5a5   : > { %v1093_v12 = vsel %vm1092_vm6, %v1091_v10, %v1087_v11 }
 0x5a6   : > { %v1095_v13 = vpack.c.bf16 %v1093_v12, %v1093_v12 }
 0x5a8   : > { %1653 = vmatmul.mubr.msk.bf16.vlgmr.msra.gmra.mrb[16].mxu1 %vm428_vm0, %v1095_v13 }
 0x5a9   : > { %1680 = vmatprep.mubr.msk.bf16.mxu1 %vm1884_vm1, %v1883_v8 }
 0x67b   : > { %v1149_v15 = vpop.f32.mrb[16].mxu1 }
 0x67c   : > { %v1155_v16 = vadd.f32 %v1149_v15, %v1094_v14  ;;  %v1654_v17 = vpop.f32.mrb[17].mxu1 }
 0x67d   : > { %v1152_v18 = vpop.f32.mrb[18].mxu1 }
 0x67e   : > { %1156 = vst.msk [vmem:[#allocation3] sm:$0xff] %vm428_vm0, %v1155_v16  ;;  %v1655_v19 = vpop.f32.mrb[19].mxu1 }
 0x685   : > { %v1158_v20 = vld [vmem:[#allocation3] sm:$0xff] }
 0x686   : > { %v1159_v22 = vadd.f32 %v1158_v20, %v2045_v0  ;;  %1200 = vst.msk [vmem:[#allocation3] sm:$0xff] %vm428_vm0, %v1883_v8  ;;  %v1754_v0 = vld [vmem:[%s2289_s10] sm:$0xff]  }
 0x687   : > { %1665 = vmatpush3.bf16.msra.mxu1 %v1754_v0 }
 0x688   : > { %v1167_v23 = vadd.f32 %v1516_v21, %v1159_v22  ;;  %1666 = vmatprep.subr.bf16.mxu1 %v1883_v8 }
 0x68a   : > { %v1171_v24 = vsel %vm428_vm0, %v1167_v23, 0.0  ;;  %1168 = vst.msk [vmem:[#allocation4] sm:$0xff] %vm428_vm0, %v1167_v23 }
 0x68b   : > { %1172 = vadd.xlane.f32.xlu1 %v1171_v24  ;;  %1667 = vmatpush3.bf16.msra.mxu1 %v1755_v32 }
 0x68c   : > { %1668 = vmatprep.subr.bf16.mxu1 %v1883_v8 }
 0x68d   : > { %v1273_v61 = vld [vmem:[#allocation3] sm:$0xff] }
 0x68f   : > { %1669 = vmatpush3.bf16.msra.mxu1 %v1756_v33 }
 0x690   : > { %1670 = vmatprep.subr.bf16.mxu1 %v1883_v8 }
 0x691   : > { %v1381_v4 = vld [vmem:[#allocation4] sm:$0xff] }
 0x693   : > { %1671 = vmatpush3.bf16.msra.mxu1 %v1757_v45 }
 0x694   : > { %1672 = vmatprep.subr.bf16.mxu1 %v1883_v8 }
 0x697   : > { %1673 = vmatpush3.bf16.msra.mxu1 %v1758_v46 }
 0x698   : > { %1674 = vmatprep.subr.bf16.mxu1 %v1883_v8 }
 0x69b   : > { %1675 = vmatpush3.bf16.msra.mxu1 %v1759_v47 }
 0x69c   : > { %1676 = vmatprep.subr.bf16.mxu1 %v1883_v8 }
 0x69f   : > { %1677 = vmatpush3.bf16.msra.mxu1 %v1760_v48 }
 0x6a0   : > { %1678 = vmatprep.subr.bf16.mxu1 %v1883_v8 }
 0x6a3   : > { %1679 = vmatpush3.bf16.msra.mxu1 %v1761_v49 }
 0x718   : > { %v1173_v25 = vpop.xlane.xlu1 %1172 }
 0x719   : > { %v1174_v26 = vmul.f32 0.03125, %v1173_v25 }
 0x71b   : > { %v1175_v27 = vsub.f32 %v1167_v23, %v1174_v26 }
 0x71d   : > { %v1176_v28 = vmul.f32 %v1175_v27, %v1175_v27 }
 0x71f   : > { %v1177_v29 = vsel %vm428_vm0, %v1176_v28, 0.0 }
 0x720   : > { %1178 = vadd.xlane.f32.xlu0 %v1177_v29 }
 0x7ad   : > { %v1179_v34 = vpop.xlane.xlu0 %1178 }
 0x7ae   : > { %v1180_v35 = vmul.f32 0.03125, %v1179_v34 }
 0x7b0   : > { %v1181_v36 = vadd.f32 1e-05, %v1180_v35 }
 0x7b2   : > { %1780 = vrsqrt.f32 %v1181_v36 }
 0x7bc   : > { %v1781_v37 = vpop.eup %1780 }
 0x7bd   : > { %v1183_v39 = vmul.f32 %v1781_v37, %v1175_v27 }
 0x7bf   : > { %v1190_v41 = vmul.f32 %v1517_v38, %v1183_v39 }
 0x7c1   : > { %v1197_v42 = vadd.f32 %v1518_v40, %v1190_v41 }
 0x7c3   : > { %v1198_v43 = vpack.c.bf16 %v1197_v42, %v1197_v42 }
 0x7c5   : > { %1199 = vst.msk [vmem:[#allocation2] sm:$0xf] %vm458_vm2, %v1198_v43 }
 0x7cc   : > { %v1201_v44 = vld [vmem:[#allocation2] sm:$0xf] }
 0x7cd   : > { %1661 = vmatmul.mubr.msk.bf16.vlgmr.msra.gmra.mrb[28].mxu0 %vm428_vm0, %v1201_v44 }
 0x8a0   : > { %v1262_v51 = vpop.f32.mrb[28].mxu0 }
 0x8a1   : > { %v1263_v52 = vadd.f32 %v1519_v50, %v1262_v51  ;;  %v1662_v53 = vpop.f32.mrb[29].mxu0 }
 0x8a2   : > { %v1265_v54 = vpop.f32.mrb[30].mxu0 }
 0x8a3   : > { %v1269_v55 = vmul.f32 0.70710677, %v1263_v52  ;;  %v1663_v56 = vpop.f32.mrb[31].mxu0  ;;  %v1268_v58 = vmul.f32 0.5, %v1263_v52 }
 0x8a5   : > { %1782 = verf.f32 %v1269_v55 }
 0x8af   : > { %v1783_v57 = vpop.eup %1782 }
 0x8b0   : > { %v1271_v8 = vadd.f32 1.0, %v1783_v57 }
 0x8b2   : > { %v1272_v59 = vmul.f32 %v1271_v8, %v1268_v58 }
 0x8b4   : > { %v1274_v60 = vpack.c.bf16 %v1272_v59, %v1272_v59 }
 0x8b6   : > { %1681 = vmatmul.mubr.bf16.vlgmr.msra.gmra.mrb[20].mxu1 %v1274_v60 }
 0x989   : > { %v1373_v62 = vpop.f32.mrb[20].mxu1 }
 0x98a   : > { %v1379_v63 = vadd.f32 %v1373_v62, %v1273_v61  ;;  %v1682_v1 = vpop.f32.mrb[21].mxu1 }
 0x98b   : > { %v1376_v2 = vpop.f32.mrb[22].mxu1 }
 0x98c   : > { %1380 = vst.msk [vmem:[#allocation3] sm:$0xff] %vm428_vm0, %v1379_v63  ;;  %v1683_v3 = vpop.f32.mrb[23].mxu1 }
 0x993   : > { %v1382_v5 = vld [vmem:[#allocation3] sm:$0xff] }
 0x994   : > { %v1383_v7 = vadd.f32 %v1382_v5, %v1381_v4 }
 0x996   : > { %v1391_v9 = vadd.f32 %v1531_v6, %v1383_v7 }
 0x998   : > { %1392 = vst.msk [vmem:[%s419_s15] sm:$0xff] %vm428_vm0, %v1391_v9 }
 0x999   : > { %1825 = shalt.err (!%p1822_p7)
}
 0x99a   : > { %s1826_s23 = scalar_lea.hbm %s2236_s28, 128  ;;  %s1830_s19 = scalar_lea.hbm %s2291_s12, 256 }
 0x99b   : > { %p1827_p8 = scmp.ne.s32.totalorder %s2236_s28, %s1826_s23  ;;  %p1831_p1 = scmp.lt.u32.totalorder %s2236_s28, %s2291_s12 }
 0x99c   : > { %p1832_p0 = scmp.lt.u32.totalorder %s1830_s19, %s1826_s23  ;;  %p1834_p6 = scmp.lt.u32.totalorder %s1826_s23, %s2236_s28 }
 0x99d   : > { %p1828_p11 = pnand %p1827_p8, %p2305_p9 }
 0x99e   : > { %p1833_p5 = por %p1832_p0, %p1831_p1 }
 0x99f   : > { %p1829_p13 = pneg %p1828_p11 }
 0x9a0   : > { %p1835_p10 = por %p1834_p6, %p1833_p5 }
 0x9a2   : > { %p1836_p12 = pnand %p1835_p10, %p1829_p13 }
 0x9a4   : > { %1839 = shalt.err (!%p1836_p12)
}
 0x9a5   : > { %1688 = dma.vmem_to_hbm [thread:$0]  (%p2305_p9), %s2238_s17, 128, %s2236_s28, %s1394_s29  }
 0x9a6 PF: > { %p1700_p2 = scmp.ge.s32.totalorder %s1878_s24, 2  ;;  %s1419_s26 = sand.u32 1, %s1866_s21  }
 0x9a7   : > { %p2306_p3 = scmp.ne.s32.totalorder %s2299_s14, 0  ;;  %s1420_s30 = scalar_lea.sflag [#allocation7], %s1419_s26 }
 0x9a9   : > { %p1695_p4 = pnand %p1700_p2, %p2306_p3 }
 0x9ab   : > { %1861 = dma.done.wait (!%p1695_p4), %s1420_s30, 128  }
 0x9ac   : > { %1863 = vsyncadd (!%p1695_p4), %s1420_s30, 4294967168  ;;  %s2307_s18 = sld [smem:[#allocation11_spill]]  ;;  %s2308_s23 = sld [smem:[#allocation12_spill]] }
 0x9ad   : > { %p23_p7 = scmp.ge.s32.totalorder %s1982_s27, 4   ;;  %s2309_s21 = smov %s1870_s22 }
 0x9ae   : > { %s2311_s24 = smov %s1982_s27 }
 0x9af   :  { %25 = sbr.rel (!%p23_p7) target bundleno = 4 (0x4), region = 110 }
 0x9b2   : > { %s2310_s22 = smov %s2307_s18 }
 0x9b6   :  { %1425 = vsyncpa [#allocation6], 1 }
 0x9b7   :  { %1427 = vsyncpa [#allocation6 + $0x1], 1 }
 0x9b8   :  { %1428 = vsyncpa [#allocation7], 1 }
 0x9b9   :  { %1430 = vsyncpa [#allocation7 + $0x1], 1 }

</bundles_post_ra>
